<compile_context>
chip_gen: v5e
topology: v5e:2x2
jax: 0.10.0
libtpu: 0.0.40
codegen_flags: <defaults>
</compile_context>

<pallas_src>
import math
import jax
import jax.numpy as jnp
from jax.experimental import pallas as pl
from jax.experimental.pallas import tpu as pltpu  # noqa: F401  (TPU backend import)

# ---- model config (small, consistent with the module) ----
D_MODEL = 32
N_HEADS = 4
HEAD_DIM = D_MODEL // N_HEADS
D_FF = 2048          # hardcoded in the PyTorch module
SEQ = 8
BATCH = 2
LN_EPS = 1e-5


def _layernorm(v, w_row, b_row):
    mu = jnp.mean(v, axis=-1, keepdims=True)
    var = jnp.mean((v - mu) ** 2, axis=-1, keepdims=True)
    return (v - mu) * jax.lax.rsqrt(var + LN_EPS) * w_row + b_row


def encoder_layer_kernel(
    x_ref,       # (B*L, D) f32   rows ordered batch-major (b*L + l)
    sp_ref,      # (8, D)   f32   packed small params (see init_params)
    wqkv_ref,    # (D, 3D)  f32   fused in-projection (already (in, out))
    bqkv_ref,    # (1, 3D)  f32
    wo_ref,      # (D, D)   f32   output projection
    w1_ref,      # (D, D_FF)  bf16
    b1_ref,      # (1, D_FF)  f32
    w2_ref,      # (D_FF, D)  bf16
    o_ref,       # (B*L, D) f32
):
    x = x_ref[...]                                   # (B*L, D)
    sp = sp_ref[...]
    ln1_w, ln1_b = sp[0:1, :], sp[1:2, :]
    bo = sp[2:3, :]
    ln2_w, ln2_b = sp[3:4, :], sp[4:5, :]
    b2 = sp[5:6, :]

    # --- norm1 ---
    h = _layernorm(x, ln1_w, ln1_b)                  # (B*L, D) f32

    # --- fused QKV projection ---
    qkv = jnp.dot(h, wqkv_ref[...],
                  preferred_element_type=jnp.float32) + bqkv_ref[...]   # (B*L, 3D)
    q = qkv[:, 0:D_MODEL].reshape(BATCH, SEQ, D_MODEL)
    k = qkv[:, D_MODEL:2 * D_MODEL].reshape(BATCH, SEQ, D_MODEL)
    v = qkv[:, 2 * D_MODEL:3 * D_MODEL].reshape(BATCH, SEQ, D_MODEL)

    # --- multi-head attention: static head loop, batched over B inside each head,
    #     output projection Wo fused into the accumulation (no concatenate) ---
    scale = 1.0 / math.sqrt(HEAD_DIM)
    attn = jnp.zeros((BATCH * SEQ, D_MODEL), jnp.float32)
    for hd in range(N_HEADS):                        # tiny static unroll
        lo = hd * HEAD_DIM
        qh = q[:, :, lo:lo + HEAD_DIM]               # (B, L, hd)
        kh = k[:, :, lo:lo + HEAD_DIM]
        vh = v[:, :, lo:lo + HEAD_DIM]
        s = jnp.einsum('bld,bmd->blm', qh, kh,
                       preferred_element_type=jnp.float32) * scale      # (B, L, L)
        s = s - jnp.max(s, axis=-1, keepdims=True)
        p = jnp.exp(s)
        p = p * pl.reciprocal(jnp.sum(p, axis=-1, keepdims=True), approx=True)
        oh = jnp.einsum('blm,bmd->bld', p, vh,
                        preferred_element_type=jnp.float32)             # (B, L, hd)
        attn = attn + jnp.dot(oh.reshape(BATCH * SEQ, HEAD_DIM),
                              wo_ref[lo:lo + HEAD_DIM, :],
                              preferred_element_type=jnp.float32)
    attn = attn + bo

    # --- residual against the normalized x (matches the module) ---
    x2 = h + attn

    # --- norm2 ---
    x3 = _layernorm(x2, ln2_w, ln2_b)

    # --- feedforward: Linear -> ReLU -> Linear (bf16 weights, f32 accumulate) ---
    ffh = jnp.dot(x3.astype(jnp.bfloat16), w1_ref[...],
                  preferred_element_type=jnp.float32) + b1_ref[...]
    ffh = jnp.maximum(ffh, 0.0)
    ff = jnp.dot(ffh.astype(jnp.bfloat16), w2_ref[...],
                 preferred_element_type=jnp.float32) + b2

    o_ref[...] = (x3 + ff).astype(o_ref.dtype)


PARAM_ORDER = ["sp", "wqkv", "bqkv", "wo", "w1", "b1", "w2"]


def init_params(key, d_model=D_MODEL, d_ff=D_FF):
    ks = jax.random.split(key, 6)
    s_d = 1.0 / math.sqrt(d_model)
    s_f = 1.0 / math.sqrt(d_ff)
    # Packed small per-feature params, one row each (rows 6..7 are padding):
    #   row 0: ln1 weight   row 1: ln1 bias
    #   row 2: attn out-proj bias (bo)
    #   row 3: ln2 weight   row 4: ln2 bias
    #   row 5: ffn second-layer bias (b2)
    sp = jnp.zeros((8, d_model), jnp.float32)
    sp = sp.at[0].set(1.0).at[3].set(1.0)
    return {
        "sp": sp,
        # fused in-projection, already transposed to (in, 3*out): h @ Wqkv
        "wqkv": jax.random.normal(ks[0], (d_model, 3 * d_model), jnp.float32) * s_d,
        "bqkv": jax.random.normal(ks[1], (1, 3 * d_model), jnp.float32) * 0.02,
        "wo": jax.random.normal(ks[2], (d_model, d_model), jnp.float32) * s_d,
        # FFN weights in bf16 (MXU-native on v5e/v6e/v7x); activations stay f32
        "w1": (jax.random.normal(ks[3], (d_model, d_ff), jnp.float32) * s_d
               ).astype(jnp.bfloat16),
        "b1": jax.random.normal(ks[4], (1, d_ff), jnp.float32) * 0.02,
        "w2": (jax.random.normal(ks[5], (d_ff, d_model), jnp.float32) * s_f
               ).astype(jnp.bfloat16),
    }


@jax.jit
def encoder_layer(x_lbd, params):
    """x_lbd: (L, B, D) float32 — PyTorch nn.MultiheadAttention default layout."""
    L, B, D = x_lbd.shape
    assert (L, B, D) == (SEQ, BATCH, D_MODEL)
    # Layout plumbing only (fused by XLA under jit): present a batch-major 2-D slab.
    x2d = jnp.transpose(x_lbd, (1, 0, 2)).reshape(B * L, D)
    flat = [params[n] for n in PARAM_ORDER]

    out2d = pl.pallas_call(
        encoder_layer_kernel,
        out_shape=jax.ShapeDtypeStruct((B * L, D), jnp.float32),
        # grid-less single invocation: every operand is a full-array VMEM block
    )(x2d, *flat)

    return jnp.transpose(out2d.reshape(B, L, D), (1, 0, 2))   # back to (L, B, D)


if __name__ == "__main__":
    key = jax.random.PRNGKey(0)
    kx, kp = jax.random.split(key)
    x = jax.random.normal(kx, (SEQ, BATCH, D_MODEL), jnp.float32)
    params = init_params(kp)

    y = encoder_layer(x, params)
    jax.block_until_ready(y)
    assert y.shape == (SEQ, BATCH, D_MODEL)
    assert bool(jnp.all(jnp.isfinite(y)))
    # TODO(synk): dropout omitted (nn.MultiheadAttention default p=0.0, eval parity only).
    print("KERNEL_OK")
</pallas_src>

<mosaic_0001>
module attributes {stable_mosaic.version = 11 : i64} {
  func.func @encoder_layer_kernel(%arg0: memref<16x32xf32, #tpu.memory_space<vmem>>, %arg1: memref<8x32xf32, #tpu.memory_space<vmem>>, %arg2: memref<32x96xf32, #tpu.memory_space<vmem>>, %arg3: memref<1x96xf32, #tpu.memory_space<vmem>>, %arg4: memref<32x32xf32, #tpu.memory_space<vmem>>, %arg5: memref<32x2048xbf16, #tpu.memory_space<vmem>>, %arg6: memref<1x2048xf32, #tpu.memory_space<vmem>>, %arg7: memref<2048x32xbf16, #tpu.memory_space<vmem>>, %arg8: memref<16x32xf32, #tpu.memory_space<vmem>>) attributes {dimension_semantics = [], scalar_prefetch = 0 : i64, scratch_operands = 0 : i64, tpu.core_type = #tpu.core_type<tc>} {
    %c0 = arith.constant 0 : index
    %c0_0 = arith.constant 0 : index
    %0 = vector.load %arg0[%c0, %c0_0] : memref<16x32xf32, #tpu.memory_space<vmem>>, vector<16x32xf32>
    %c0_1 = arith.constant 0 : index
    %c0_2 = arith.constant 0 : index
    %1 = vector.load %arg1[%c0_1, %c0_2] : memref<8x32xf32, #tpu.memory_space<vmem>>, vector<8x32xf32>
    %2 = vector.extract_strided_slice %1 {offsets = [0, 0], sizes = [1, 32], strides = [1, 1]} : vector<8x32xf32> to vector<1x32xf32>
    %3 = vector.extract_strided_slice %1 {offsets = [1, 0], sizes = [1, 32], strides = [1, 1]} : vector<8x32xf32> to vector<1x32xf32>
    %4 = vector.extract_strided_slice %1 {offsets = [2, 0], sizes = [1, 32], strides = [1, 1]} : vector<8x32xf32> to vector<1x32xf32>
    %5 = vector.extract_strided_slice %1 {offsets = [3, 0], sizes = [1, 32], strides = [1, 1]} : vector<8x32xf32> to vector<1x32xf32>
    %6 = vector.extract_strided_slice %1 {offsets = [4, 0], sizes = [1, 32], strides = [1, 1]} : vector<8x32xf32> to vector<1x32xf32>
    %7 = vector.extract_strided_slice %1 {offsets = [5, 0], sizes = [1, 32], strides = [1, 1]} : vector<8x32xf32> to vector<1x32xf32>
    %cst = arith.constant dense<0.000000e+00> : vector<16xf32>
    %8 = vector.multi_reduction <add>, %0, %cst [1] : vector<16x32xf32> to vector<16xf32>
    %9 = vector.shape_cast %8 : vector<16xf32> to vector<16x1xf32>
    %cst_3 = arith.constant 3.200000e+01 : f32
    %10 = vector.broadcast %cst_3 : f32 to vector<16x1xf32>
    %11 = arith.divf %9, %10 : vector<16x1xf32>
    %12 = vector.broadcast %11 : vector<16x1xf32> to vector<16x32xf32>
    %13 = arith.subf %0, %12 : vector<16x32xf32>
    %14 = arith.mulf %13, %13 : vector<16x32xf32>
    %cst_4 = arith.constant dense<0.000000e+00> : vector<16xf32>
    %15 = vector.multi_reduction <add>, %14, %cst_4 [1] : vector<16x32xf32> to vector<16xf32>
    %16 = vector.shape_cast %15 : vector<16xf32> to vector<16x1xf32>
    %cst_5 = arith.constant 3.200000e+01 : f32
    %17 = vector.broadcast %cst_5 : f32 to vector<16x1xf32>
    %18 = arith.divf %16, %17 : vector<16x1xf32>
    %19 = vector.broadcast %11 : vector<16x1xf32> to vector<16x32xf32>
    %20 = arith.subf %0, %19 : vector<16x32xf32>
    %cst_6 = arith.constant 9.99999974E-6 : f32
    %21 = vector.broadcast %cst_6 : f32 to vector<16x1xf32>
    %22 = arith.addf %18, %21 : vector<16x1xf32>
    %23 = math.rsqrt %22 : vector<16x1xf32>
    %24 = vector.broadcast %23 : vector<16x1xf32> to vector<16x32xf32>
    %25 = arith.mulf %20, %24 : vector<16x32xf32>
    %26 = vector.broadcast %2 : vector<1x32xf32> to vector<16x32xf32>
    %27 = arith.mulf %25, %26 : vector<16x32xf32>
    %28 = vector.broadcast %3 : vector<1x32xf32> to vector<16x32xf32>
    %29 = arith.addf %27, %28 : vector<16x32xf32>
    %c0_7 = arith.constant 0 : index
    %c0_8 = arith.constant 0 : index
    %30 = vector.load %arg2[%c0_7, %c0_8] : memref<32x96xf32, #tpu.memory_space<vmem>>, vector<32x96xf32>
    %cst_9 = arith.constant dense<0.000000e+00> : vector<16x96xf32>
    %31 = tpu.matmul %29, %30, %cst_9 {dimension_numbers = #tpu.dot_dimension_numbers<[1], [0], [0], [1], [0, 0, 1, 1], [], []>} : vector<16x32xf32>, vector<32x96xf32>, vector<16x96xf32> -> vector<16x96xf32>
    %c0_10 = arith.constant 0 : index
    %c0_11 = arith.constant 0 : index
    %32 = vector.load %arg3[%c0_10, %c0_11] : memref<1x96xf32, #tpu.memory_space<vmem>>, vector<1x96xf32>
    %33 = vector.broadcast %32 : vector<1x96xf32> to vector<16x96xf32>
    %34 = arith.addf %31, %33 : vector<16x96xf32>
    %35 = vector.extract_strided_slice %34 {offsets = [0, 0], sizes = [16, 32], strides = [1, 1]} : vector<16x96xf32> to vector<16x32xf32>
    %36 = vector.shape_cast %35 : vector<16x32xf32> to vector<2x8x32xf32>
    %37 = vector.extract_strided_slice %34 {offsets = [0, 32], sizes = [16, 32], strides = [1, 1]} : vector<16x96xf32> to vector<16x32xf32>
    %38 = vector.shape_cast %37 : vector<16x32xf32> to vector<2x8x32xf32>
    %39 = vector.extract_strided_slice %34 {offsets = [0, 64], sizes = [16, 32], strides = [1, 1]} : vector<16x96xf32> to vector<16x32xf32>
    %40 = vector.shape_cast %39 : vector<16x32xf32> to vector<2x8x32xf32>
    %cst_12 = arith.constant 0.000000e+00 : f32
    %41 = vector.broadcast %cst_12 : f32 to vector<16x32xf32>
    %42 = vector.extract_strided_slice %36 {offsets = [0, 0, 0], sizes = [2, 8, 8], strides = [1, 1, 1]} : vector<2x8x32xf32> to vector<2x8x8xf32>
    %43 = vector.extract_strided_slice %38 {offsets = [0, 0, 0], sizes = [2, 8, 8], strides = [1, 1, 1]} : vector<2x8x32xf32> to vector<2x8x8xf32>
    %44 = vector.extract_strided_slice %40 {offsets = [0, 0, 0], sizes = [2, 8, 8], strides = [1, 1, 1]} : vector<2x8x32xf32> to vector<2x8x8xf32>
    "tpu.trace_start"() <{level = 10 : i32, message = "bld,bmd->blm"}> : () -> ()
    %cst_13 = arith.constant dense<0.000000e+00> : vector<2x8x8xf32>
    %45 = tpu.matmul %42, %43, %cst_13 {dimension_numbers = #tpu.dot_dimension_numbers<[2], [2], [1], [1], [0, 0, 0, 1, 1, 1], [0], [0]>} : vector<2x8x8xf32>, vector<2x8x8xf32>, vector<2x8x8xf32> -> vector<2x8x8xf32>
    "tpu.trace_stop"() : () -> ()
    %cst_14 = arith.constant 0.353553385 : f32
    %46 = vector.broadcast %cst_14 : f32 to vector<2x8x8xf32>
    %47 = arith.mulf %45, %46 : vector<2x8x8xf32>
    %cst_15 = arith.constant dense<0xFF800000> : vector<2x8xf32>
    %48 = vector.multi_reduction <maximumf>, %47, %cst_15 [2] : vector<2x8x8xf32> to vector<2x8xf32>
    %49 = vector.shape_cast %48 : vector<2x8xf32> to vector<2x8x1xf32>
    %50 = vector.broadcast %49 : vector<2x8x1xf32> to vector<2x8x8xf32>
    %51 = arith.subf %47, %50 : vector<2x8x8xf32>
    %52 = math.exp %51 : vector<2x8x8xf32>
    %cst_16 = arith.constant dense<0.000000e+00> : vector<2x8xf32>
    %53 = vector.multi_reduction <add>, %52, %cst_16 [2] : vector<2x8x8xf32> to vector<2x8xf32>
    %54 = vector.shape_cast %53 : vector<2x8xf32> to vector<2x8x1xf32>
    %55 = tpu.reciprocal %54 {approx = true} : vector<2x8x1xf32> -> vector<2x8x1xf32>
    %56 = vector.broadcast %55 : vector<2x8x1xf32> to vector<2x8x8xf32>
    %57 = arith.mulf %52, %56 : vector<2x8x8xf32>
    "tpu.trace_start"() <{level = 10 : i32, message = "blm,bmd->bld"}> : () -> ()
    %cst_17 = arith.constant dense<0.000000e+00> : vector<2x8x8xf32>
    %58 = tpu.matmul %57, %44, %cst_17 {dimension_numbers = #tpu.dot_dimension_numbers<[2], [1], [1], [2], [0, 0, 0, 1, 1, 2], [0], [0]>} : vector<2x8x8xf32>, vector<2x8x8xf32>, vector<2x8x8xf32> -> vector<2x8x8xf32>
    "tpu.trace_stop"() : () -> ()
    %59 = vector.shape_cast %58 : vector<2x8x8xf32> to vector<16x8xf32>
    %c0_18 = arith.constant 0 : index
    %c0_19 = arith.constant 0 : index
    %60 = vector.load %arg4[%c0_18, %c0_19] : memref<32x32xf32, #tpu.memory_space<vmem>>, vector<8x32xf32>
    %cst_20 = arith.constant dense<0.000000e+00> : vector<16x32xf32>
    %61 = tpu.matmul %59, %60, %cst_20 {dimension_numbers = #tpu.dot_dimension_numbers<[1], [0], [0], [1], [0, 0, 1, 1], [], []>} : vector<16x8xf32>, vector<8x32xf32>, vector<16x32xf32> -> vector<16x32xf32>
    %62 = arith.addf %41, %61 : vector<16x32xf32>
    %63 = vector.extract_strided_slice %36 {offsets = [0, 0, 8], sizes = [2, 8, 8], strides = [1, 1, 1]} : vector<2x8x32xf32> to vector<2x8x8xf32>
    %64 = vector.extract_strided_slice %38 {offsets = [0, 0, 8], sizes = [2, 8, 8], strides = [1, 1, 1]} : vector<2x8x32xf32> to vector<2x8x8xf32>
    %65 = vector.extract_strided_slice %40 {offsets = [0, 0, 8], sizes = [2, 8, 8], strides = [1, 1, 1]} : vector<2x8x32xf32> to vector<2x8x8xf32>
    "tpu.trace_start"() <{level = 10 : i32, message = "bld,bmd->blm"}> : () -> ()
    %cst_21 = arith.constant dense<0.000000e+00> : vector<2x8x8xf32>
    %66 = tpu.matmul %63, %64, %cst_21 {dimension_numbers = #tpu.dot_dimension_numbers<[2], [2], [1], [1], [0, 0, 0, 1, 1, 1], [0], [0]>} : vector<2x8x8xf32>, vector<2x8x8xf32>, vector<2x8x8xf32> -> vector<2x8x8xf32>
    "tpu.trace_stop"() : () -> ()
    %cst_22 = arith.constant 0.353553385 : f32
    %67 = vector.broadcast %cst_22 : f32 to vector<2x8x8xf32>
    %68 = arith.mulf %66, %67 : vector<2x8x8xf32>
    %cst_23 = arith.constant dense<0xFF800000> : vector<2x8xf32>
    %69 = vector.multi_reduction <maximumf>, %68, %cst_23 [2] : vector<2x8x8xf32> to vector<2x8xf32>
    %70 = vector.shape_cast %69 : vector<2x8xf32> to vector<2x8x1xf32>
    %71 = vector.broadcast %70 : vector<2x8x1xf32> to vector<2x8x8xf32>
    %72 = arith.subf %68, %71 : vector<2x8x8xf32>
    %73 = math.exp %72 : vector<2x8x8xf32>
    %cst_24 = arith.constant dense<0.000000e+00> : vector<2x8xf32>
    %74 = vector.multi_reduction <add>, %73, %cst_24 [2] : vector<2x8x8xf32> to vector<2x8xf32>
    %75 = vector.shape_cast %74 : vector<2x8xf32> to vector<2x8x1xf32>
    %76 = tpu.reciprocal %75 {approx = true} : vector<2x8x1xf32> -> vector<2x8x1xf32>
    %77 = vector.broadcast %76 : vector<2x8x1xf32> to vector<2x8x8xf32>
    %78 = arith.mulf %73, %77 : vector<2x8x8xf32>
    "tpu.trace_start"() <{level = 10 : i32, message = "blm,bmd->bld"}> : () -> ()
    %cst_25 = arith.constant dense<0.000000e+00> : vector<2x8x8xf32>
    %79 = tpu.matmul %78, %65, %cst_25 {dimension_numbers = #tpu.dot_dimension_numbers<[2], [1], [1], [2], [0, 0, 0, 1, 1, 2], [0], [0]>} : vector<2x8x8xf32>, vector<2x8x8xf32>, vector<2x8x8xf32> -> vector<2x8x8xf32>
    "tpu.trace_stop"() : () -> ()
    %80 = vector.shape_cast %79 : vector<2x8x8xf32> to vector<16x8xf32>
    %c8 = arith.constant 8 : index
    %c0_26 = arith.constant 0 : index
    %81 = vector.load %arg4[%c8, %c0_26] : memref<32x32xf32, #tpu.memory_space<vmem>>, vector<8x32xf32>
    %cst_27 = arith.constant dense<0.000000e+00> : vector<16x32xf32>
    %82 = tpu.matmul %80, %81, %cst_27 {dimension_numbers = #tpu.dot_dimension_numbers<[1], [0], [0], [1], [0, 0, 1, 1], [], []>} : vector<16x8xf32>, vector<8x32xf32>, vector<16x32xf32> -> vector<16x32xf32>
    %83 = arith.addf %62, %82 : vector<16x32xf32>
    %84 = vector.extract_strided_slice %36 {offsets = [0, 0, 16], sizes = [2, 8, 8], strides = [1, 1, 1]} : vector<2x8x32xf32> to vector<2x8x8xf32>
    %85 = vector.extract_strided_slice %38 {offsets = [0, 0, 16], sizes = [2, 8, 8], strides = [1, 1, 1]} : vector<2x8x32xf32> to vector<2x8x8xf32>
    %86 = vector.extract_strided_slice %40 {offsets = [0, 0, 16], sizes = [2, 8, 8], strides = [1, 1, 1]} : vector<2x8x32xf32> to vector<2x8x8xf32>
    "tpu.trace_start"() <{level = 10 : i32, message = "bld,bmd->blm"}> : () -> ()
    %cst_28 = arith.constant dense<0.000000e+00> : vector<2x8x8xf32>
    %87 = tpu.matmul %84, %85, %cst_28 {dimension_numbers = #tpu.dot_dimension_numbers<[2], [2], [1], [1], [0, 0, 0, 1, 1, 1], [0], [0]>} : vector<2x8x8xf32>, vector<2x8x8xf32>, vector<2x8x8xf32> -> vector<2x8x8xf32>
    "tpu.trace_stop"() : () -> ()
    %cst_29 = arith.constant 0.353553385 : f32
    %88 = vector.broadcast %cst_29 : f32 to vector<2x8x8xf32>
    %89 = arith.mulf %87, %88 : vector<2x8x8xf32>
    %cst_30 = arith.constant dense<0xFF800000> : vector<2x8xf32>
    %90 = vector.multi_reduction <maximumf>, %89, %cst_30 [2] : vector<2x8x8xf32> to vector<2x8xf32>
    %91 = vector.shape_cast %90 : vector<2x8xf32> to vector<2x8x1xf32>
    %92 = vector.broadcast %91 : vector<2x8x1xf32> to vector<2x8x8xf32>
    %93 = arith.subf %89, %92 : vector<2x8x8xf32>
    %94 = math.exp %93 : vector<2x8x8xf32>
    %cst_31 = arith.constant dense<0.000000e+00> : vector<2x8xf32>
    %95 = vector.multi_reduction <add>, %94, %cst_31 [2] : vector<2x8x8xf32> to vector<2x8xf32>
    %96 = vector.shape_cast %95 : vector<2x8xf32> to vector<2x8x1xf32>
    %97 = tpu.reciprocal %96 {approx = true} : vector<2x8x1xf32> -> vector<2x8x1xf32>
    %98 = vector.broadcast %97 : vector<2x8x1xf32> to vector<2x8x8xf32>
    %99 = arith.mulf %94, %98 : vector<2x8x8xf32>
    "tpu.trace_start"() <{level = 10 : i32, message = "blm,bmd->bld"}> : () -> ()
    %cst_32 = arith.constant dense<0.000000e+00> : vector<2x8x8xf32>
    %100 = tpu.matmul %99, %86, %cst_32 {dimension_numbers = #tpu.dot_dimension_numbers<[2], [1], [1], [2], [0, 0, 0, 1, 1, 2], [0], [0]>} : vector<2x8x8xf32>, vector<2x8x8xf32>, vector<2x8x8xf32> -> vector<2x8x8xf32>
    "tpu.trace_stop"() : () -> ()
    %101 = vector.shape_cast %100 : vector<2x8x8xf32> to vector<16x8xf32>
    %c16 = arith.constant 16 : index
    %c0_33 = arith.constant 0 : index
    %102 = vector.load %arg4[%c16, %c0_33] : memref<32x32xf32, #tpu.memory_space<vmem>>, vector<8x32xf32>
    %cst_34 = arith.constant dense<0.000000e+00> : vector<16x32xf32>
    %103 = tpu.matmul %101, %102, %cst_34 {dimension_numbers = #tpu.dot_dimension_numbers<[1], [0], [0], [1], [0, 0, 1, 1], [], []>} : vector<16x8xf32>, vector<8x32xf32>, vector<16x32xf32> -> vector<16x32xf32>
    %104 = arith.addf %83, %103 : vector<16x32xf32>
    %105 = vector.extract_strided_slice %36 {offsets = [0, 0, 24], sizes = [2, 8, 8], strides = [1, 1, 1]} : vector<2x8x32xf32> to vector<2x8x8xf32>
    %106 = vector.extract_strided_slice %38 {offsets = [0, 0, 24], sizes = [2, 8, 8], strides = [1, 1, 1]} : vector<2x8x32xf32> to vector<2x8x8xf32>
    %107 = vector.extract_strided_slice %40 {offsets = [0, 0, 24], sizes = [2, 8, 8], strides = [1, 1, 1]} : vector<2x8x32xf32> to vector<2x8x8xf32>
    "tpu.trace_start"() <{level = 10 : i32, message = "bld,bmd->blm"}> : () -> ()
    %cst_35 = arith.constant dense<0.000000e+00> : vector<2x8x8xf32>
    %108 = tpu.matmul %105, %106, %cst_35 {dimension_numbers = #tpu.dot_dimension_numbers<[2], [2], [1], [1], [0, 0, 0, 1, 1, 1], [0], [0]>} : vector<2x8x8xf32>, vector<2x8x8xf32>, vector<2x8x8xf32> -> vector<2x8x8xf32>
    "tpu.trace_stop"() : () -> ()
    %cst_36 = arith.constant 0.353553385 : f32
    %109 = vector.broadcast %cst_36 : f32 to vector<2x8x8xf32>
    %110 = arith.mulf %108, %109 : vector<2x8x8xf32>
    %cst_37 = arith.constant dense<0xFF800000> : vector<2x8xf32>
    %111 = vector.multi_reduction <maximumf>, %110, %cst_37 [2] : vector<2x8x8xf32> to vector<2x8xf32>
    %112 = vector.shape_cast %111 : vector<2x8xf32> to vector<2x8x1xf32>
    %113 = vector.broadcast %112 : vector<2x8x1xf32> to vector<2x8x8xf32>
    %114 = arith.subf %110, %113 : vector<2x8x8xf32>
    %115 = math.exp %114 : vector<2x8x8xf32>
    %cst_38 = arith.constant dense<0.000000e+00> : vector<2x8xf32>
    %116 = vector.multi_reduction <add>, %115, %cst_38 [2] : vector<2x8x8xf32> to vector<2x8xf32>
    %117 = vector.shape_cast %116 : vector<2x8xf32> to vector<2x8x1xf32>
    %118 = tpu.reciprocal %117 {approx = true} : vector<2x8x1xf32> -> vector<2x8x1xf32>
    %119 = vector.broadcast %118 : vector<2x8x1xf32> to vector<2x8x8xf32>
    %120 = arith.mulf %115, %119 : vector<2x8x8xf32>
    "tpu.trace_start"() <{level = 10 : i32, message = "blm,bmd->bld"}> : () -> ()
    %cst_39 = arith.constant dense<0.000000e+00> : vector<2x8x8xf32>
    %121 = tpu.matmul %120, %107, %cst_39 {dimension_numbers = #tpu.dot_dimension_numbers<[2], [1], [1], [2], [0, 0, 0, 1, 1, 2], [0], [0]>} : vector<2x8x8xf32>, vector<2x8x8xf32>, vector<2x8x8xf32> -> vector<2x8x8xf32>
    "tpu.trace_stop"() : () -> ()
    %122 = vector.shape_cast %121 : vector<2x8x8xf32> to vector<16x8xf32>
    %c24 = arith.constant 24 : index
    %c0_40 = arith.constant 0 : index
    %123 = vector.load %arg4[%c24, %c0_40] : memref<32x32xf32, #tpu.memory_space<vmem>>, vector<8x32xf32>
    %cst_41 = arith.constant dense<0.000000e+00> : vector<16x32xf32>
    %124 = tpu.matmul %122, %123, %cst_41 {dimension_numbers = #tpu.dot_dimension_numbers<[1], [0], [0], [1], [0, 0, 1, 1], [], []>} : vector<16x8xf32>, vector<8x32xf32>, vector<16x32xf32> -> vector<16x32xf32>
    %125 = arith.addf %104, %124 : vector<16x32xf32>
    %126 = vector.broadcast %4 : vector<1x32xf32> to vector<16x32xf32>
    %127 = arith.addf %125, %126 : vector<16x32xf32>
    %128 = arith.addf %29, %127 : vector<16x32xf32>
    %cst_42 = arith.constant dense<0.000000e+00> : vector<16xf32>
    %129 = vector.multi_reduction <add>, %128, %cst_42 [1] : vector<16x32xf32> to vector<16xf32>
    %130 = vector.shape_cast %129 : vector<16xf32> to vector<16x1xf32>
    %cst_43 = arith.constant 3.200000e+01 : f32
    %131 = vector.broadcast %cst_43 : f32 to vector<16x1xf32>
    %132 = arith.divf %130, %131 : vector<16x1xf32>
    %133 = vector.broadcast %132 : vector<16x1xf32> to vector<16x32xf32>
    %134 = arith.subf %128, %133 : vector<16x32xf32>
    %135 = arith.mulf %134, %134 : vector<16x32xf32>
    %cst_44 = arith.constant dense<0.000000e+00> : vector<16xf32>
    %136 = vector.multi_reduction <add>, %135, %cst_44 [1] : vector<16x32xf32> to vector<16xf32>
    %137 = vector.shape_cast %136 : vector<16xf32> to vector<16x1xf32>
    %cst_45 = arith.constant 3.200000e+01 : f32
    %138 = vector.broadcast %cst_45 : f32 to vector<16x1xf32>
    %139 = arith.divf %137, %138 : vector<16x1xf32>
    %140 = vector.broadcast %132 : vector<16x1xf32> to vector<16x32xf32>
    %141 = arith.subf %128, %140 : vector<16x32xf32>
    %cst_46 = arith.constant 9.99999974E-6 : f32
    %142 = vector.broadcast %cst_46 : f32 to vector<16x1xf32>
    %143 = arith.addf %139, %142 : vector<16x1xf32>
    %144 = math.rsqrt %143 : vector<16x1xf32>
    %145 = vector.broadcast %144 : vector<16x1xf32> to vector<16x32xf32>
    %146 = arith.mulf %141, %145 : vector<16x32xf32>
    %147 = vector.broadcast %5 : vector<1x32xf32> to vector<16x32xf32>
    %148 = arith.mulf %146, %147 : vector<16x32xf32>
    %149 = vector.broadcast %6 : vector<1x32xf32> to vector<16x32xf32>
    %150 = arith.addf %148, %149 : vector<16x32xf32>
    %151 = arith.truncf %150 : vector<16x32xf32> to vector<16x32xbf16>
    %c0_47 = arith.constant 0 : index
    %c0_48 = arith.constant 0 : index
    %152 = vector.load %arg5[%c0_47, %c0_48] : memref<32x2048xbf16, #tpu.memory_space<vmem>>, vector<32x2048xbf16>
    %cst_49 = arith.constant dense<0.000000e+00> : vector<16x2048xf32>
    %153 = tpu.matmul %151, %152, %cst_49 {dimension_numbers = #tpu.dot_dimension_numbers<[1], [0], [0], [1], [0, 0, 1, 1], [], []>} : vector<16x32xbf16>, vector<32x2048xbf16>, vector<16x2048xf32> -> vector<16x2048xf32>
    %c0_50 = arith.constant 0 : index
    %c0_51 = arith.constant 0 : index
    %154 = vector.load %arg6[%c0_50, %c0_51] : memref<1x2048xf32, #tpu.memory_space<vmem>>, vector<1x2048xf32>
    %155 = vector.broadcast %154 : vector<1x2048xf32> to vector<16x2048xf32>
    %156 = arith.addf %153, %155 : vector<16x2048xf32>
    %cst_52 = arith.constant 0.000000e+00 : f32
    %157 = vector.broadcast %cst_52 : f32 to vector<16x2048xf32>
    %158 = arith.maximumf %156, %157 : vector<16x2048xf32>
    %159 = arith.truncf %158 : vector<16x2048xf32> to vector<16x2048xbf16>
    %c0_53 = arith.constant 0 : index
    %c0_54 = arith.constant 0 : index
    %160 = vector.load %arg7[%c0_53, %c0_54] : memref<2048x32xbf16, #tpu.memory_space<vmem>>, vector<2048x32xbf16>
    %cst_55 = arith.constant dense<0.000000e+00> : vector<16x32xf32>
    %161 = tpu.matmul %159, %160, %cst_55 {dimension_numbers = #tpu.dot_dimension_numbers<[1], [0], [0], [1], [0, 0, 1, 1], [], []>} : vector<16x2048xbf16>, vector<2048x32xbf16>, vector<16x32xf32> -> vector<16x32xf32>
    %162 = vector.broadcast %7 : vector<1x32xf32> to vector<16x32xf32>
    %163 = arith.addf %161, %162 : vector<16x32xf32>
    %164 = arith.addf %150, %163 : vector<16x32xf32>
    %c0_56 = arith.constant 0 : index
    %c0_57 = arith.constant 0 : index
    %165 = vector.load %arg8[%c0_56, %c0_57] : memref<16x32xf32, #tpu.memory_space<vmem>>, vector<16x32xf32>
    tpu.vector_store %arg8[%c0_56, %c0_57], %164 {strides = array<i32>} : memref<16x32xf32, #tpu.memory_space<vmem>>, vector<16x32xf32>,
    return
  }
}

</mosaic_0001>

<bundles_post_ra>
// kernel: encoder_layer.1
= control target key start
LH: loop header
LB: loop body
LE: loop exit
PB: predicated region body
PF: predicated region fallthrough
CT: control target
= control target key end

     0   :  { %vm33_vm0 = vcmask 261120   ;;  %v3501_v2 = vmov 32.0   ;;  %s3502_s19 = smov 96   ;;  %s3503_s20 = smov 88   ;;  %vm131_vm8 = vcmask 64512   ;;  %s4395_s0 = inlined_call_operand.vmem [shape: f32[16,32], index: 0, kind: input, shape index: {}]   ;;  %s4396_s3 = inlined_call_operand.vmem [shape: f32[1,96], index: 3, kind: input, shape index: {}]   ;;  %s4397_s2 = inlined_call_operand.vmem [shape: f32[32,96], index: 2, kind: input, shape index: {}]   ;;  %s4398_s1 = inlined_call_operand.vmem [shape: f32[8,32], index: 1, kind: input, shape index: {}]   ;;  %s4399_s4 = inlined_call_operand.vmem [shape: f32[32,32], index: 4, kind: input, shape index: {}]   ;;  %s4400_s5 = inlined_call_operand.vmem [shape: bf16[32,2048], index: 5, kind: input, shape index: {}]   ;;  %s4401_s7 = inlined_call_operand.vmem [shape: bf16[2048,32], index: 7, kind: input, shape index: {}]   ;;  %s4402_s6 = inlined_call_operand.vmem [shape: f32[1,2048], index: 6, kind: input, shape index: {}]   ;;  %s4403_s8 = inlined_call_operand.vmem [shape: f32[16,32], index: 8, kind: output, shape index: {}]  }
   0x1   :  { %v30_v0 = vld [vmem:[%s4395_s0] sm:$0xff]  ;;  %3458 = vrcp.f32 %v3501_v2  ;;  %v31_v3 = vld [vmem:[%s4395_s0 + $0x8] sm:$0xff]  ;;  %v94_v16 = vld [vmem:[%s4397_s2 + $0x18] sm:$0xff]  ;;  %s3505_s21 = smov 64   ;;  %s3506_s24 = smov 80  }
   0x2   :  { %v34_v1 = vsel %vm33_vm0, %v30_v0, 0.0  ;;  %v37_v4 = vsel %vm33_vm0, %v31_v3, 0.0  ;;  %117 = vmatpush.msra.mxu0 %v94_v16  ;;  %v93_v17 = vld [vmem:[%s4397_s2 + $0x10] sm:$0xff]  ;;  %v92_v18 = vld [vmem:[%s4397_s2 + $0x8] sm:$0xff]  ;;  %v91_v19 = vld [vmem:[%s4397_s2] sm:$0xff]  ;;  %s3507_s25 = smov 56  }
   0x3   :  { %35 = vadd.xlane.f32.xlu0 %v34_v1  ;;  %38 = vadd.xlane.f32.xlu1 %v37_v4  ;;  %v3588_v33 = vld [vmem:[%s4398_s1] sm:$0xff]  ;;  %s3508_s26 = smov 112   ;;  %s3509_s29 = smov 48  }
   0x4   :  { %118 = vmatpush.msra.mxu0 %v93_v17  ;;  %v85_v35 = vperm.slane %v3588_v33, 0  ;;  %v88_v38 = vperm.slane %v3588_v33, 1  ;;  %v3457_v48 = vld [vmem:[%s4396_s3] ss:$0 sm:$0xff]  ;;  %s3504_s3 = smov 120   ;;  %s3510_s30 = smov 72  }
   0x5   :  { %s3511_s0 = smov 104   ;;  %s3512_s11 = smov 40  }
   0x6   :  { %119 = vmatpush.msra.mxu0 %v92_v18 }
   0x7   :  { %v3459_v5 = vpop.eup %3458 }
   0x8   :  { %v41_v6 = vmul.f32 32.0, %v3459_v5  ;;  %vm45_vm1 = vweird.f32 %v3459_v5  ;;  %120 = vmatpush.msra.mxu0 %v91_v19 }
   0xa   :  { %v42_v7 = vsub.f32 1.0, %v41_v6 }
   0xc   :  { %v43_v8 = vmul.f32 %v3459_v5, %v42_v7 }
   0xe   :  { %v44_v9 = vadd.f32 %v3459_v5, %v43_v8 }
  0x10   :  { %v3566_v10 = vsel %vm45_vm1, %v3459_v5, %v44_v9 }
  0x76   :  { %v36_v11 = vpop.xlane.xlu0 %35  ;;  %v39_v20 = vpop.xlane.xlu1 %38 }
  0x77   :  { %v47_v12 = vmul.f32 %v3566_v10, %v36_v11  ;;  %v48_v21 = vmul.f32 %v3566_v10, %v39_v20 }
  0x79   :  { %v49_v13 = vsub.f32 %v30_v0, %v47_v12  ;;  %v50_v23 = vsub.f32 %v31_v3, %v48_v21 }
  0x7b   :  { %v51_v14 = vmul.f32 %v49_v13, %v49_v13  ;;  %v52_v25 = vmul.f32 %v50_v23, %v50_v23 }
  0x7d   :  { %v53_v15 = vsel %vm33_vm0, %v51_v14, 0.0  ;;  %v56_v27 = vsel %vm33_vm0, %v52_v25, 0.0 }
  0x7e   :  { %54 = vadd.xlane.f32.xlu0 %v53_v15  ;;  %57 = vadd.xlane.f32.xlu2 %v56_v27  ;;  %v259_v15 = vld [vmem:[%s4399_s4] sm:$0xff] }
  0x7f   :  { %443 = vmatpush.msrb.mxu0 %v259_v15 }
  0xf1   :  { %v55_v22 = vpop.xlane.xlu0 %54  ;;  %v58_v41 = vpop.xlane.xlu2 %57 }
  0xf2   :  { %v59_v24 = vmul.f32 %v55_v22, %v3566_v10  ;;  %v60_v42 = vmul.f32 %v58_v41, %v3566_v10 }
  0xf4   :  { %v61_v26 = vadd.f32 1e-05, %v59_v24  ;;  %v62_v43 = vadd.f32 1e-05, %v60_v42 }
  0xf6   :  { %3460 = vrsqrt.f32 %v61_v26  ;;  %vm69_vm3 = vweird.f32 %v61_v26  ;;  %vm79_vm5 = vweird.f32 %v62_v43 }
  0xf7   :  { %3462 = vrsqrt.f32 %v62_v43 }
  0xfc   :  { %v3461_v28 = vpop.eup %3460 }
  0xfd   :  { %v64_v29 = vmul.f32 %v3461_v28, %v61_v26  ;;  %vm70_vm2 = vweird.f32 %v3461_v28  ;;  %v3463_v44 = vpop.eup %3462 }
  0xfe   :  { %vm71_vm4 = vmor %vm69_vm3, %vm70_vm2  ;;  %v74_v45 = vmul.f32 %v3463_v44, %v62_v43  ;;  %vm80_vm6 = vweird.f32 %v3463_v44 }
  0xff   :  { %v65_v30 = vmul.f32 %v3461_v28, %v64_v29  ;;  %vm81_vm7 = vmor %vm79_vm5, %vm80_vm6 }
 0x100   :  { %v75_v46 = vmul.f32 %v3463_v44, %v74_v45  ;;  %v392_v45 = vld [vmem:[%s4399_s4 + $0x8] sm:$0xff] }
 0x101   :  { %v66_v31 = vmul.f32 0.5, %v65_v30 }
 0x102   :  { %v76_v47 = vmul.f32 0.5, %v75_v46 }
 0x103   :  { %v67_v32 = vsub.f32 1.5, %v66_v31 }
 0x104   :  { %v77_v49 = vsub.f32 1.5, %v76_v47 }
 0x105   :  { %v68_v34 = vmul.f32 %v3461_v28, %v67_v32 }
 0x106   :  { %v78_v50 = vmul.f32 %v3463_v44, %v77_v49 }
 0x107   :  { %v72_v36 = vsel %vm71_vm4, %v3461_v28, %v68_v34 }
 0x108   :  { %v83_v37 = vmul.f32 %v72_v36, %v49_v13  ;;  %v82_v53 = vsel %vm81_vm7, %v3463_v44, %v78_v50 }
 0x109   :  { %v84_v54 = vmul.f32 %v82_v53, %v50_v23 }
 0x10a   :  { %v86_v39 = vmul.f32 %v85_v35, %v83_v37 }
 0x10b   :  { %v87_v55 = vmul.f32 %v85_v35, %v84_v54 }
 0x10c   :  { %v3592_v40 = vadd.f32 %v88_v38, %v86_v39 }
 0x10d   :  { %v3603_v56 = vadd.f32 %v88_v38, %v87_v55 }
 0x10e   :  { %2595 = vmatmul.msk.f32.vlgmr.msra.gmra.mxu0 %vm33_vm0, %v3592_v40 }
 0x116   :  { %2596 = vmatmul.msk.f32.gmra.mxu0 %vm33_vm0, %v3603_v56 }
 0x18b   :  { %v122_v51 = vpop.f32.mrf.mxu0 }
 0x18c   :  { %v3600_v52 = vadd.f32 %v3457_v48, %v122_v51 }
 0x18e   :  { %129 = vrot.lane.b32.xlu1 %v3600_v52, %s3502_s19 }
 0x193   :  { %v125_v61 = vpop.f32.mrf.mxu0 }
 0x194   :  { %v3613_v62 = vadd.f32 %v3457_v48, %v125_v61 }
 0x196   :  { %262 = vrot.lane.b32.xlu1 %v3600_v52, %s3503_s20 }
 0x200   :  { %v130_v57 = vpop.permute.xlu1 %129 }
 0x201   :  { %2597 = vmatpush.xpose.msk.msra.mxu1 %vm131_vm8, %v130_v57 }
 0x204   :  { %2598 = vmatmul.msk.f32.vlgmr.msra.gmra.mxu1 %vm131_vm8, %v3600_v52 }
 0x208   :  { %v263_v13 = vpop.permute.xlu1 %262 }
 0x281   :  { %v153_v58 = vpop.f32.mrf.mxu1 }
 0x282   :  { %v183_v59 = vmul.f32 0.35355338, %v153_v58 }
 0x284   :  { %v185_v60 = vsel %vm131_vm8, %v183_v59, -inf }
 0x285   :  { %186 = vmax.xlane.f32.xlu2 %v185_v60 }
 0x29d   :  { %157 = vrot.lane.b32.xlu2 %v3613_v62, %s3502_s19 }
 0x2a5   :  { %260 = vrot.lane.b32.xlu2 %v3600_v52, %s3504_s3 }
 0x2f8   :  { %v187_v63 = vpop.xlane.xlu2 %186 }
 0x2f9   :  { %v191_v0 = vsub.f32 %v183_v59, %v187_v63 }
 0x2fb   :  { %v193_v1 = vmul.f32 1.442695, %v191_v0 }
 0x2fd   :  { %3464 = vpow2.f32 %v193_v1 }
 0x300   :  { %v158_v2 = vpop.permute.xlu2 %157 }
 0x301   :  { %2599 = vmatpush.xpose.msk.msra.mxu2 %vm131_vm8, %v158_v2 }
 0x303   :  { %v3465_v3 = vpop.eup %3464 }
 0x304   :  { %2600 = vmatmul.msk.f32.vlgmr.msra.gmra.mxu2 %vm131_vm8, %v3613_v62  ;;  %v197_v4 = vsel %vm131_vm8, %v3465_v3, 0.0 }
 0x305   :  { %198 = vadd.xlane.f32.xlu0 %v197_v4 }
 0x308   :  { %v261_v14 = vpop.permute.xlu2 %260 }
 0x319   :  { %207 = vrot.lane.b32.xlu0 %v3600_v52, %s3505_s21 }
 0x378   :  { %v199_v5 = vpop.xlane.xlu0 %198 }
 0x379   :  { %3466 = vrcp.f32 %v199_v5 }
 0x37f   :  { %v3467_v7 = vpop.eup %3466 }
 0x380   :  { %v205_v12 = vmul.f32 %v3467_v7, %v3465_v3 }
 0x387   :  { %v180_v6 = vpop.f32.mrf.mxu2 }
 0x388   :  { %v184_v8 = vmul.f32 0.35355338, %v180_v6 }
 0x38a   :  { %v188_v9 = vsel %vm131_vm8, %v184_v8, -inf }
 0x38b   :  { %v208_v11 = vpop.permute.xlu0 %207  ;;  %189 = vmax.xlane.f32.xlu1 %v188_v9 }
 0x38c   :  { %228 = vmatpush.msrb.mxu1 %v208_v11 }
 0x38d   :  { %2601 = vmatmul.msk.f32.vlgmr.msrb.gmra.mxu1 %vm131_vm8, %v205_v12 }
 0x38e   :  { %2603 = vmatpush.xpose.msk.msra.mxu1 %vm131_vm8, %v263_v13 }
 0x395   :  { %2604 = vmatmul.msk.f32.vlgmr.msra.gmra.mxu1 %vm131_vm8, %v261_v14 }
 0x3fe   :  { %v190_v16 = vpop.xlane.xlu1 %189 }
 0x3ff   :  { %v192_v17 = vsub.f32 %v184_v8, %v190_v16 }
 0x401   :  { %v195_v18 = vmul.f32 1.442695, %v192_v17  ;;  %v583_v17 = vld [vmem:[%s4399_s4 + $0x10] sm:$0xff] }
 0x403   :  { %3468 = vpow2.f32 %v195_v18 }
 0x409   :  { %v3469_v19 = vpop.eup %3468 }
 0x40a   :  { %v230_v20 = vpop.f32.mrf.mxu1  ;;  %v200_v21 = vsel %vm131_vm8, %v3469_v19, 0.0 }
 0x40b   :  { %2611 = vmatmul.msk.f32.vlgmr.msrb.gmra.mxu0 %vm131_vm8, %v230_v20  ;;  %201 = vadd.xlane.f32.xlu2 %v200_v21 }
 0x412   :  { %v285_v22 = vpop.f32.mrf.mxu1 }
 0x413   :  { %v316_v23 = vmul.f32 0.35355338, %v285_v22 }
 0x415   :  { %v318_v24 = vsel %vm131_vm8, %v316_v23, -inf }
 0x416   :  { %319 = vmax.xlane.f32.xlu0 %v318_v24 }
 0x423   :  { %290 = vrot.lane.b32.xlu2 %v3613_v62, %s3503_s20 }
 0x42a   :  { %233 = vrot.lane.b32.xlu0 %v3613_v62, %s3505_s21 }
 0x42b   :  { %453 = vrot.lane.b32.xlu2 %v3600_v52, %s3506_s24 }
 0x432   :  { %340 = vrot.lane.b32.xlu0 %v3600_v52, %s3507_s25 }
 0x43a   :  { %451 = vrot.lane.b32.xlu0 %v3600_v52, %s3508_s26 }
 0x47e   :  { %v202_v25 = vpop.xlane.xlu2 %201 }
 0x486   :  { %v291_v26 = vpop.permute.xlu2 %290 }
 0x487   :  { %2605 = vmatpush.xpose.msk.msrb.mxu2 %vm131_vm8, %v291_v26 }
 0x488   :  { %v3687_v22 = vpop.f32.mrf.mxu0 }
 0x489   :  { %v320_v27 = vpop.xlane.xlu0 %319 }
 0x48a   :  { %v324_v28 = vsub.f32 %v316_v23, %v320_v27 }
 0x48b   :  { %414 = vmatpush.msra.mxu2 %v392_v45 }
 0x48c   :  { %v326_v29 = vmul.f32 1.442695, %v324_v28 }
 0x48e   :  { %3470 = vpow2.f32 %v326_v29  ;;  %v454_v37 = vpop.permute.xlu2 %453 }
 0x48f   :  { %3472 = vrcp.f32 %v202_v25 }
 0x494   :  { %v3471_v30 = vpop.eup %3470 }
 0x495   :  { %v330_v31 = vsel %vm131_vm8, %v3471_v30, 0.0  ;;  %v3473_v32 = vpop.eup %3472 }
 0x496   :  { %331 = vadd.xlane.f32.xlu1 %v330_v31  ;;  %v206_v35 = vmul.f32 %v3473_v32, %v3469_v19 }
 0x49c   :  { %v234_v34 = vpop.permute.xlu0 %233 }
 0x49d   :  { %254 = vmatpush.msra.mxu3 %v234_v34 }
 0x49e   :  { %2602 = vmatmul.msk.f32.vlgmr.msra.gmra.mxu3 %vm131_vm8, %v206_v35 }
 0x4a4   :  { %v341_v36 = vpop.permute.xlu0 %340 }
 0x4a5   :  { %361 = vmatpush.msrb.mxu3 %v341_v36 }
 0x4a7   :  { %2613 = vmatpush.xpose.msk.msra.mxu3 %vm131_vm8, %v454_v37 }
 0x4ac   :  { %v452_v42 = vpop.permute.xlu0 %451 }
 0x4af   :  { %288 = vrot.lane.b32.xlu1 %v3613_v62, %s3504_s3 }
 0x509   :  { %v332_v38 = vpop.xlane.xlu1 %331 }
 0x50a   :  { %3474 = vrcp.f32 %v332_v38 }
 0x510   :  { %v3475_v39 = vpop.eup %3474 }
 0x511   :  { %v338_v41 = vmul.f32 %v3475_v39, %v3471_v30 }
 0x513   :  { %2607 = vmatmul.msk.f32.vlgmr.msrb.gmra.mxu3 %vm131_vm8, %v338_v41 }
 0x51b   :  { %2614 = vmatmul.msk.f32.vlgmr.msra.gmra.mxu3 %vm131_vm8, %v452_v42 }
 0x521   :  { %v256_v43 = vpop.f32.mrf.mxu3  ;;  %v289_v44 = vpop.permute.xlu1 %288 }
 0x522   :  { %2606 = vmatmul.msk.f32.vlgmr.msrb.gmra.mxu2 %vm131_vm8, %v289_v44  ;;  %2612 = vmatmul.msk.f32.gmra.mxu0 %vm131_vm8, %v256_v43 }
 0x523   :  { %605 = vmatpush.msrb.mxu2 %v583_v17 }
 0x596   :  { %v363_v46 = vpop.f32.mrf.mxu3 }
 0x597   :  { %2609 = vmatmul.msk.f32.vlgmr.msra.gmra.mxu2 %vm131_vm8, %v363_v46 }
 0x59e   :  { %v476_v47 = vpop.f32.mrf.mxu3 }
 0x59f   :  { %v507_v48 = vmul.f32 0.35355338, %v476_v47  ;;  %v3691_v27 = vpop.f32.mrf.mxu0 }
 0x5a1   :  { %v509_v49 = vsel %vm131_vm8, %v507_v48, -inf }
 0x5a2   :  { %510 = vmax.xlane.f32.xlu2 %v509_v49 }
 0x5a5   :  { %v313_v50 = vpop.f32.mrf.mxu2 }
 0x5a6   :  { %v317_v51 = vmul.f32 0.35355338, %v313_v50 }
 0x5a8   :  { %v321_v53 = vsel %vm131_vm8, %v317_v51, -inf }
 0x5a9   :  { %322 = vmax.xlane.f32.xlu1 %v321_v53 }
 0x5ba   :  { %479 = vrot.lane.b32.xlu2 %v3613_v62, %s3508_s26 }
 0x5c2   :  { %366 = vrot.lane.b32.xlu1 %v3613_v62, %s3507_s25 }
 0x5ca   :  { %531 = vrot.lane.b32.xlu1 %v3600_v52, %s3509_s29 }
 0x5d2   :  { %645 = vrot.lane.b32.xlu1 %v3613_v62, %s3510_s30 }
 0x615   :  { %v511_v54 = vpop.xlane.xlu2 %510 }
 0x616   :  { %v515_v55 = vsub.f32 %v507_v48, %v511_v54 }
 0x618   :  { %v517_v57 = vmul.f32 1.442695, %v515_v55 }
 0x61a   :  { %3476 = vpow2.f32 %v517_v57 }
 0x61c   :  { %v323_v58 = vpop.xlane.xlu1 %322 }
 0x61d   :  { %v325_v59 = vsub.f32 %v317_v51, %v323_v58  ;;  %v480_v5 = vpop.permute.xlu2 %479 }
 0x61f   :  { %v328_v60 = vmul.f32 1.442695, %v325_v59 }
 0x620   :  { %v3477_v61 = vpop.eup %3476 }
 0x621   :  { %3478 = vpow2.f32 %v328_v60  ;;  %v521_v63 = vsel %vm131_vm8, %v3477_v61, 0.0 }
 0x622   :  { %522 = vadd.xlane.f32.xlu2 %v521_v63 }
 0x627   :  { %v3479_v0 = vpop.eup %3478 }
 0x628   :  { %v333_v1 = vsel %vm131_vm8, %v3479_v0, 0.0 }
 0x629   :  { %334 = vadd.xlane.f32.xlu0 %v333_v1  ;;  %v416_v1 = vpop.f32.mrf.mxu2 }
 0x634   :  { %v367_v2 = vpop.permute.xlu1 %366 }
 0x635   :  { %387 = vmatpush.msrb.mxu1 %v367_v2 }
 0x63a   :  { %643 = vrot.lane.b32.xlu2 %v3613_v62, %s3511_s0 }
 0x63c   :  { %v532_v3 = vpop.permute.xlu1 %531 }
 0x63d   :  { %481 = vrot.lane.b32.xlu0 %v3613_v62, %s3506_s24  ;;  %552 = vmatpush.msrb.mxu3 %v532_v3 }
 0x644   :  { %v646_v4 = vpop.permute.xlu1 %645 }
 0x645   :  { %617 = vrot.lane.b32.xlu0 %v3600_v52, %s3510_s30  ;;  %2623 = vmatpush.xpose.msk.msra.mxu3 %vm131_vm8, %v646_v4  ;;  %v446_v4 = vadd.f32 %v3687_v22, %v416_v1  ;;  %v2713_v1 = vld [vmem:[%s4400_s5 + $0xd0] sm:$0xf0] }
 0x64d   :  { %615 = vrot.lane.b32.xlu0 %v3600_v52, %s3511_s0 }
 0x695   :  { %v523_v6 = vpop.xlane.xlu2 %522 }
 0x696   :  { %3480 = vrcp.f32 %v523_v6  ;;  %v779_v6 = vperm.slane %v3588_v33, 2 }
 0x69c   :  { %v3481_v7 = vpop.eup %3480  ;;  %v335_v8 = vpop.xlane.xlu0 %334 }
 0x69d   :  { %v529_v9 = vmul.f32 %v3481_v7, %v3477_v61  ;;  %3482 = vrcp.f32 %v335_v8  ;;  %v644_v13 = vpop.permute.xlu2 %643 }
 0x69f   :  { %2617 = vmatmul.msk.f32.vlgmr.msrb.gmra.mxu3 %vm131_vm8, %v529_v9 }
 0x6a3   :  { %v3483_v11 = vpop.eup %3482 }
 0x6a4   :  { %v339_v12 = vmul.f32 %v3483_v11, %v3479_v0 }
 0x6a6   :  { %2608 = vmatmul.msk.f32.vlgmr.msrb.gmra.mxu1 %vm131_vm8, %v339_v12 }
 0x6a7   :  { %2624 = vmatmul.msk.f32.vlgmr.msra.gmra.mxu3 %vm131_vm8, %v644_v13 }
 0x6af   :  { %v482_v14 = vpop.permute.xlu0 %481 }
 0x6b0   :  { %2615 = vmatpush.xpose.msk.msra.mxu1 %vm131_vm8, %v482_v14 }
 0x6b3   :  { %2616 = vmatmul.msk.f32.vlgmr.msra.gmra.mxu1 %vm131_vm8, %v480_v5 }
 0x6b7   :  { %v618_v15 = vpop.permute.xlu0 %617 }
 0x6b8   :  { %2621 = vmatpush.xpose.msk.msra.mxu0 %vm131_vm8, %v618_v15 }
 0x6bf   :  { %v616_v16 = vpop.permute.xlu0 %615 }
 0x6c0   :  { %2622 = vmatmul.msk.f32.vlgmr.msra.gmra.mxu0 %vm131_vm8, %v616_v16 }
 0x722   :  { %v554_v18 = vpop.f32.mrf.mxu3 }
 0x723   :  { %v389_v19 = vpop.f32.mrf.mxu1 }
 0x724   :  { %2610 = vmatmul.msk.f32.gmra.mxu2 %vm131_vm8, %v389_v19 }
 0x72a   :  { %v668_v20 = vpop.f32.mrf.mxu3 }
 0x72b   :  { %v672_v21 = vmul.f32 0.35355338, %v668_v20 }
 0x72c   :  { %2619 = vmatmul.msk.f32.vlgmr.msrb.gmra.mxu2 %vm131_vm8, %v554_v18 }
 0x72d   :  { %v676_v23 = vsel %vm131_vm8, %v672_v21, -inf }
 0x72e   :  { %677 = vmax.xlane.f32.xlu2 %v676_v23 }
 0x730   :  { %v504_v24 = vpop.f32.mrf.mxu1 }
 0x731   :  { %v508_v25 = vmul.f32 0.35355338, %v504_v24 }
 0x733   :  { %v512_v26 = vsel %vm131_vm8, %v508_v25, -inf }
 0x734   :  { %513 = vmax.xlane.f32.xlu1 %v512_v26 }
 0x73d   :  { %v640_v28 = vpop.f32.mrf.mxu0 }
 0x73e   :  { %v671_v29 = vmul.f32 0.35355338, %v640_v28 }
 0x740   :  { %v673_v30 = vsel %vm131_vm8, %v671_v29, -inf }
 0x741   :  { %674 = vmax.xlane.f32.xlu0 %v673_v30  ;;  %v3309_v30 = vld [vmem:[%s4400_s5 + $0xbc] sm:$0xf0] }
 0x746   :  { %557 = vrot.lane.b32.xlu2 %v3613_v62, %s3509_s29 }
 0x7a1   :  { %v678_v31 = vpop.xlane.xlu2 %677 }
 0x7a2   :  { %v680_v36 = vsub.f32 %v672_v21, %v678_v31  ;;  %v3301_v31 = vld [vmem:[%s4400_s5 + $0x84] sm:$0xf] }
 0x7a4   :  { %v683_v38 = vmul.f32 1.442695, %v680_v36  ;;  %v3310_v36 = vld [vmem:[%s4400_s5 + $0xc4] sm:$0xf0] }
 0x7a7   :  { %v514_v32 = vpop.xlane.xlu1 %513  ;;  %v419_v2 = vpop.f32.mrf.mxu2 }
 0x7a8   :  { %v516_v34 = vsub.f32 %v508_v25, %v514_v32  ;;  %v449_v12 = vadd.f32 %v3691_v27, %v419_v2  ;;  %v2719_v2 = vld [vmem:[%s4400_s5 + $0x98] sm:$0xf] }
 0x7a9   :  { %v558_v35 = vpop.permute.xlu2 %557 }
 0x7aa   :  { %v519_v37 = vmul.f32 1.442695, %v516_v34  ;;  %578 = vmatpush.msrb.mxu1 %v558_v35  ;;  %v2697_v34 = vld [vmem:[%s4400_s5 + $0xc0] sm:$0xf0]  ;;  %v2703_v35 = vld [vmem:[%s4400_s5 + $0x88] sm:$0xf] }
 0x7ac   :  { %3484 = vpow2.f32 %v519_v37 }
 0x7ad   :  { %3486 = vpow2.f32 %v683_v38  ;;  %v2700_v38 = vor.u32 %v3301_v31, %v2697_v34 }
 0x7af   :  { %v607_v3 = vpop.f32.mrf.mxu2  ;;  %1086 = vmatpush.bf16.msra.mxu2 %v2700_v38 }
 0x7b0   :  { %v613_v5 = vadd.f32 %v607_v3, %v446_v4  ;;  %v3312_v3 = vld [vmem:[%s4400_s5 + $0xd4] sm:$0xf0] }
 0x7b2   :  { %v3485_v39 = vpop.eup %3484 }
 0x7b3   :  { %v524_v41 = vsel %vm131_vm8, %v3485_v39, 0.0  ;;  %v3487_v45 = vpop.eup %3486 }
 0x7b4   :  { %v675_v42 = vpop.xlane.xlu0 %674  ;;  %525 = vadd.xlane.f32.xlu1 %v524_v41  ;;  %v688_v46 = vsel %vm131_vm8, %v3487_v45, 0.0  ;;  %v3302_v41 = vld [vmem:[%s4400_s5 + $0x8c] sm:$0xf] }
 0x7b5   :  { %v679_v43 = vsub.f32 %v671_v29, %v675_v42  ;;  %v2695_v29 = vld [vmem:[%s4400_s5 + $0x80] sm:$0xf]  ;;  %v2705_v42 = vld [vmem:[%s4400_s5 + $0xc8] sm:$0xf0] }
 0x7b6   :  { %v2696_v32 = vor.u32 %v3309_v30, %v2695_v29 }
 0x7b7   :  { %v681_v44 = vmul.f32 1.442695, %v679_v43 }
 0x7b9   :  { %3488 = vpow2.f32 %v681_v44  ;;  %v2708_v44 = vor.u32 %v3302_v41, %v2705_v42 }
 0x7bc   :  { %689 = vadd.xlane.f32.xlu1 %v688_v46  ;;  %v3293_v46 = vld [vmem:[%s4400_s5 + $0x3c] sm:$0xf0] }
 0x7bf   :  { %v3489_v47 = vpop.eup %3488 }
 0x7c0   :  { %v685_v48 = vsel %vm131_vm8, %v3489_v47, 0.0 }
 0x7c1   :  { %686 = vadd.xlane.f32.xlu0 %v685_v48 }
 0x7d5   :  { %695 = vrot.lane.b32.xlu0 %v3600_v52, %s3512_s11  ;;  %721 = vrot.lane.b32.xlu1 %v3613_v62, %s3512_s11  ;;  %v747_v52 = vld [vmem:[%s4399_s4 + $0x18] sm:$0xff] }
 0x7d6   :  { %769 = vmatpush.msrb.mxu3 %v747_v52  ;;  %v3311_v52 = vld [vmem:[%s4400_s5 + $0xcc] sm:$0xf0] }
 0x7d8   :  { %1114 = vmatpush.bf16.msra.mxu3 %v2708_v44  ;;  %v2727_v44 = vld [vmem:[%s4400_s5 + $0xa0] sm:$0xf] }
 0x827   :  { %v526_v49 = vpop.xlane.xlu1 %525 }
 0x828   :  { %3490 = vrcp.f32 %v526_v49 }
 0x82e   :  { %v3491_v50 = vpop.eup %3490 }
 0x82f   :  { %v530_v51 = vmul.f32 %v3491_v50, %v3485_v39  ;;  %v690_v53 = vpop.xlane.xlu1 %689  ;;  %v2704_v39 = vor.u32 %v3310_v36, %v2703_v35  ;;  %v2633_v50 = vld [vmem:[%s4400_s5 + $0x40] sm:$0xf0]  ;;  %v828_v35 = vperm.slane %v3588_v33, 3 }
 0x830   :  { %3492 = vrcp.f32 %v690_v53 }
 0x831   :  { %2618 = vmatmul.msk.f32.vlgmr.msrb.gmra.mxu1 %vm131_vm8, %v530_v51  ;;  %v2639_v51 = vld [vmem:[%s4400_s5 + $0x8] sm:$0xf] }
 0x834   :  { %v687_v54 = vpop.xlane.xlu0 %686 }
 0x835   :  { %3494 = vrcp.f32 %v687_v54  ;;  %v3294_v54 = vld [vmem:[%s4400_s5 + $0x44] sm:$0xf0] }
 0x836   :  { %v3493_v55 = vpop.eup %3492 }
 0x837   :  { %v694_v58 = vmul.f32 %v3493_v55, %v3487_v45  ;;  %v2631_v45 = vld [vmem:[%s4400_s5] sm:$0xf]  ;;  %v3286_v55 = vld [vmem:[%s4400_s5 + $0xc] sm:$0xf] }
 0x838   :  { %v2632_v49 = vor.u32 %v3293_v46, %v2631_v45  ;;  %v3313_v45 = vld [vmem:[%s4400_s5 + $0xdc] sm:$0xf0] }
 0x83b   :  { %v3495_v57 = vpop.eup %3494 }
 0x83c   :  { %v693_v59 = vmul.f32 %v3495_v57, %v3489_v47  ;;  %v3285_v47 = vld [vmem:[%s4400_s5 + $0x4] sm:$0xf]  ;;  %v2641_v57 = vld [vmem:[%s4400_s5 + $0x48] sm:$0xf0] }
 0x83d   :  { %v2636_v53 = vor.u32 %v3285_v47, %v2633_v50  ;;  %v2737_v50 = vld [vmem:[%s4400_s5 + $0xe8] sm:$0xf0] }
 0x83f   :  { %1087 = vmatpush.bf16.msra.mxu2 %v2636_v53  ;;  %v2728_v53 = vor.u32 %v3313_v45, %v2727_v44  ;;  %v3337_v44 = vld [vmem:[%s4401_s7 + $0xa0] sm:$0xff] }
 0x840   :  { %v3329_v45 = vld [vmem:[%s4401_s7 + $0x60] sm:$0xff] }
 0x847   :  { %v696_v60 = vpop.permute.xlu0 %695  ;;  %v722_v61 = vpop.permute.xlu1 %721 }
 0x848   :  { %716 = vmatpush.msra.mxu1 %v696_v60  ;;  %742 = vmatpush.msrb.mxu0 %v722_v61  ;;  %v2711_v61 = vld [vmem:[%s4400_s5 + $0x90] sm:$0xf] }
 0x849   :  { %2625 = vmatmul.msk.f32.vlgmr.msra.gmra.mxu1 %vm131_vm8, %v693_v59  ;;  %2626 = vmatmul.msk.f32.vlgmr.msrb.gmra.mxu0 %vm131_vm8, %v694_v58  ;;  %v2640_v58 = vor.u32 %v3294_v54, %v2639_v51  ;;  %v2644_v59 = vor.u32 %v3286_v55, %v2641_v57  ;;  %v2663_v55 = vld [vmem:[%s4400_s5 + $0x20] sm:$0xf] }
 0x84a   :  { %1072 = vmatpush.bf16.msrb.mxu1 %v2696_v32  ;;  %1100 = vmatpush.bf16.msra.mxu0 %v2704_v39  ;;  %v831_v39 = vperm.slane %v3588_v33, 4  ;;  %v2729_v33 = vld [vmem:[%s4400_s5 + $0xe0] sm:$0xf0]  ;;  %v3297_v57 = vld [vmem:[%s4400_s5 + $0x5c] sm:$0xf0] }
 0x84b   :  { %1115 = vmatpush.bf16.msra.mxu3 %v2644_v59 }
 0x84e   :  { %1073 = vmatpush.bf16.msrb.mxu1 %v2632_v49  ;;  %1101 = vmatpush.bf16.msra.mxu0 %v2640_v58  ;;  %v3306_v49 = vld [vmem:[%s4400_s5 + $0xac] sm:$0xf] }
 0x84f   :  { %v2740_v59 = vor.u32 %v3306_v49, %v2737_v50  ;;  %v3344_v49 = vld [vmem:[%s4401_s7 + $0xd8] sm:$0xff]  ;;  %v3319_v50 = vld [vmem:[%s4401_s7 + $0x10] sm:$0xff] }
 0x8ae   :  { %v580_v62 = vpop.f32.mrf.mxu1 }
 0x8af   :  { %2620 = vmatmul.msk.f32.gmra.mxu2 %vm131_vm8, %v580_v62  ;;  %v3303_v62 = vld [vmem:[%s4400_s5 + $0x94] sm:$0xf] }
 0x8b0   :  { %v2716_v4 = vor.u32 %v3303_v62, %v2713_v1  ;;  %v3298_v62 = vld [vmem:[%s4400_s5 + $0x64] sm:$0xf0]  ;;  %v2664_v1 = vor.u32 %v3297_v57, %v2663_v55 }
 0x8b1   :  { %v3318_v55 = vld [vmem:[%s4401_s7 + $0x8] sm:$0xff] }
 0x8b2   :  { %1142 = vmatpush.bf16.msrb.mxu2 %v2716_v4  ;;  %v3334_v57 = vld [vmem:[%s4401_s7 + $0x88] sm:$0xff] }
 0x8c6   :  { %v718_v63 = vpop.f32.mrf.mxu1  ;;  %v744_v0 = vpop.f32.mrf.mxu0 }
 0x8c7   :  { %2627 = vmatmul.msk.f32.vlgmr.msrb.gmra.mxu3 %vm131_vm8, %v718_v63 }
 0x8cf   :  { %2628 = vmatmul.msk.f32.gmra.mxu3 %vm131_vm8, %v744_v0  ;;  %v2712_v0 = vor.u32 %v3311_v52, %v2711_v61  ;;  %v2665_v61 = vld [vmem:[%s4400_s5 + $0x60] sm:$0xf0]  ;;  %v2671_v52 = vld [vmem:[%s4400_s5 + $0x28] sm:$0xf] }
 0x8d1   :  { %1128 = vmatpush.bf16.msra.mxu1 %v2712_v0  ;;  %v2673_v0 = vld [vmem:[%s4400_s5 + $0x68] sm:$0xf0] }
 0x932   :  { %v610_v11 = vpop.f32.mrf.mxu2 }
 0x933   :  { %v614_v14 = vadd.f32 %v610_v11, %v449_v12  ;;  %v3295_v12 = vld [vmem:[%s4400_s5 + $0x4c] sm:$0xf0] }
 0x94a   :  { %v771_v7 = vpop.f32.mrf.mxu3 }
 0x94b   :  { %v777_v8 = vadd.f32 %v771_v7, %v613_v5  ;;  %v2720_v5 = vor.u32 %v3312_v3, %v2719_v2  ;;  %v2647_v7 = vld [vmem:[%s4400_s5 + $0x10] sm:$0xf]  ;;  %v2672_v3 = vor.u32 %v3298_v62, %v2671_v52  ;;  %v3356_v52 = vld [vmem:[%s4401_s7 + $0x138] sm:$0xff] }
 0x94c   :  { %v3372_v62 = vld [vmem:[%s4401_s7 + $0x1b8] sm:$0xff] }
 0x94d   :  { %v780_v9 = vadd.f32 %v779_v6, %v777_v8  ;;  %1156 = vmatpush.bf16.msrb.mxu0 %v2720_v5  ;;  %v2743_v5 = vld [vmem:[%s4400_s5 + $0xb0] sm:$0xf] }
 0x94f   :  { %v782_v13 = vadd.f32 %v780_v9, %v3592_v40 }
 0x951   :  { %v784_v15 = vsel %vm33_vm0, %v782_v13, 0.0 }
 0x952   :  { %785 = vadd.xlane.f32.xlu2 %v784_v15  ;;  %v774_v16 = vpop.f32.mrf.mxu3  ;;  %v2648_v15 = vor.u32 %v3295_v12, %v2647_v7  ;;  %v2745_v7 = vld [vmem:[%s4400_s5 + $0xf0] sm:$0xf0]  ;;  %v2753_v12 = vld [vmem:[%s4400_s5 + $0xf8] sm:$0xf0] }
 0x953   :  { %v778_v17 = vadd.f32 %v774_v16, %v614_v14  ;;  %v2649_v16 = vld [vmem:[%s4400_s5 + $0x50] sm:$0xf0] }
 0x954   :  { %1129 = vmatpush.bf16.msra.mxu1 %v2648_v15  ;;  %v2679_v15 = vld [vmem:[%s4400_s5 + $0x30] sm:$0xf] }
 0x955   :  { %v781_v18 = vadd.f32 %v779_v6, %v778_v17  ;;  %v3304_v6 = vld [vmem:[%s4400_s5 + $0x9c] sm:$0xf]  ;;  %v2655_v17 = vld [vmem:[%s4400_s5 + $0x18] sm:$0xf] }
 0x957   :  { %v783_v19 = vadd.f32 %v781_v18, %v3603_v56  ;;  %v3296_v18 = vld [vmem:[%s4400_s5 + $0x54] sm:$0xf0] }
 0x959   :  { %v787_v20 = vsel %vm33_vm0, %v783_v19, 0.0 }
 0x95a   :  { %788 = vadd.xlane.f32.xlu0 %v787_v20  ;;  %v2656_v20 = vor.u32 %v3296_v18, %v2655_v17 }
 0x95c   :  { %1157 = vmatpush.bf16.msrb.mxu0 %v2656_v20  ;;  %v2681_v20 = vld [vmem:[%s4400_s5 + $0x70] sm:$0xf0] }
 0x9c5   :  { %v786_v21 = vpop.xlane.xlu2 %785 }
 0x9c6   :  { %v790_v22 = vmul.f32 %v786_v21, %v3566_v10  ;;  %v3288_v21 = vld [vmem:[%s4400_s5 + $0x1c] sm:$0xf] }
 0x9c8   :  { %v3718_v23 = vsub.f32 %v782_v13, %v790_v22  ;;  %v3287_v13 = vld [vmem:[%s4400_s5 + $0x14] sm:$0xf]  ;;  %v2657_v22 = vld [vmem:[%s4400_s5 + $0x58] sm:$0xf0] }
 0x9ca   :  { %v794_v40 = vmul.f32 %v3718_v23, %v3718_v23 }
 0x9cc   :  { %v796_v24 = vsel %vm33_vm0, %v794_v40, 0.0 }
 0x9cd   :  { %797 = vadd.xlane.f32.xlu1 %v796_v24  ;;  %v789_v25 = vpop.xlane.xlu0 %788  ;;  %v2660_v24 = vor.u32 %v3288_v21, %v2657_v22  ;;  %v2687_v21 = vld [vmem:[%s4400_s5 + $0x38] sm:$0xf] }
 0x9ce   :  { %v791_v26 = vmul.f32 %v789_v25, %v3566_v10  ;;  %v3300_v22 = vld [vmem:[%s4400_s5 + $0x74] sm:$0xf0] }
 0x9d0   :  { %v3724_v27 = vsub.f32 %v783_v19, %v791_v26  ;;  %v2652_v19 = vor.u32 %v3287_v13, %v2649_v16  ;;  %v3299_v16 = vld [vmem:[%s4400_s5 + $0x6c] sm:$0xf0] }
 0x9d2   :  { %v795_v56 = vmul.f32 %v3724_v27, %v3724_v27  ;;  %1143 = vmatpush.bf16.msrb.mxu2 %v2652_v19  ;;  %v3291_v19 = vld [vmem:[%s4400_s5 + $0x34] sm:$0xf] }
 0x9d4   :  { %v799_v28 = vsel %vm33_vm0, %v795_v56, 0.0 }
 0x9d5   :  { %800 = vadd.xlane.f32.xlu2 %v799_v28 }
 0xa40   :  { %v798_v37 = vpop.xlane.xlu1 %797 }
 0xa41   :  { %v802_v43 = vmul.f32 %v798_v37, %v3566_v10 }
 0xa43   :  { %v3763_v48 = vadd.f32 1e-05, %v802_v43 }
 0xa45   :  { %3496 = vrsqrt.f32 %v3763_v48  ;;  %vm812_vm10 = vweird.f32 %v3763_v48 }
 0xa48   :  { %v801_v60 = vpop.xlane.xlu2 %800 }
 0xa49   :  { %v803_v63 = vmul.f32 %v801_v60, %v3566_v10  ;;  %v2721_v10 = vld [vmem:[%s4400_s5 + $0xd8] sm:$0xf0]  ;;  %v3289_v60 = vld [vmem:[%s4400_s5 + $0x24] sm:$0xf] }
 0xa4a   :  { %v2724_v11 = vor.u32 %v3304_v6, %v2721_v10  ;;  %v2668_v2 = vor.u32 %v3289_v60, %v2665_v61  ;;  %v3315_v6 = vld [vmem:[%s4400_s5 + $0xec] sm:$0xf0]  ;;  %v3307_v10 = vld [vmem:[%s4400_s5 + $0xb4] sm:$0xf]  ;;  %v3317_v60 = vld [vmem:[%s4401_s7] sm:$0xff] }
 0xa4b   :  { %v3497_v8 = vpop.eup %3496  ;;  %v805_v9 = vadd.f32 1e-05, %v803_v63  ;;  %v3290_v63 = vld [vmem:[%s4400_s5 + $0x2c] sm:$0xf]  ;;  %v2744_v13 = vor.u32 %v3315_v6, %v2743_v5  ;;  %v3333_v61 = vld [vmem:[%s4401_s7 + $0x80] sm:$0xff]  ;;  %v3363_v5 = vld [vmem:[%s4401_s7 + $0x170] sm:$0xff] }
 0xa4c   :  { %v807_v14 = vmul.f32 %v3497_v8, %v3763_v48  ;;  %1170 = vmatpush.bf16.msrb.mxu3 %v2724_v11  ;;  %vm813_vm9 = vweird.f32 %v3497_v8  ;;  %v3314_v48 = vld [vmem:[%s4400_s5 + $0xe4] sm:$0xf0]  ;;  %v2676_v4 = vor.u32 %v3290_v63, %v2673_v0  ;;  %v3308_v11 = vld [vmem:[%s4400_s5 + $0xbc] sm:$0xf]  ;;  %v3325_v63 = vld [vmem:[%s4401_s7 + $0x40] sm:$0xff] }
 0xa4d   :  { %3498 = vrsqrt.f32 %v805_v9  ;;  %vm814_vm11 = vmor %vm812_vm10, %vm813_vm9  ;;  %vm822_vm13 = vweird.f32 %v805_v9  ;;  %v2756_v18 = vor.u32 %v3308_v11, %v2753_v12  ;;  %v3341_v0 = vld [vmem:[%s4401_s7 + $0xc0] sm:$0xff]  ;;  %v3379_v6 = vld [vmem:[%s4401_s7 + $0x1f0] sm:$0xff] }
 0xa4e   :  { %v808_v40 = vmul.f32 %v3497_v8, %v807_v14  ;;  %v2748_v14 = vor.u32 %v3307_v10, %v2745_v7  ;;  %v3354_v10 = vld [vmem:[%s4401_s7 + $0x128] sm:$0xff] }
 0xa4f   :  { %v3370_v7 = vld [vmem:[%s4401_s7 + $0x1a8] sm:$0xff] }
 0xa50   :  { %v809_v25 = vmul.f32 0.5, %v808_v40  ;;  %1171 = vmatpush.bf16.msrb.mxu3 %v2660_v24  ;;  %v3292_v40 = vld [vmem:[%s4400_s5 + $0x3c] sm:$0xf]  ;;  %v3362_v11 = vld [vmem:[%s4401_s7 + $0x168] sm:$0xff] }
 0xa51   :  { %v2689_v24 = vld [vmem:[%s4400_s5 + $0x78] sm:$0xf0]  ;;  %v3378_v12 = vld [vmem:[%s4401_s7 + $0x1e8] sm:$0xff] }
 0xa52   :  { %v810_v26 = vsub.f32 1.5, %v809_v25  ;;  %v2680_v25 = vor.u32 %v3299_v16, %v2679_v15  ;;  %v3361_v15 = vld [vmem:[%s4401_s7 + $0x160] sm:$0xff] }
 0xa53   :  { %v3499_v56 = vpop.eup %3498  ;;  %v3377_v16 = vld [vmem:[%s4401_s7 + $0x1e0] sm:$0xff] }
 0xa54   :  { %v811_v28 = vmul.f32 %v3497_v8, %v810_v26  ;;  %v817_v29 = vmul.f32 %v3499_v56, %v805_v9  ;;  %vm823_vm12 = vweird.f32 %v3499_v56  ;;  %v3316_v9 = vld [vmem:[%s4400_s5 + $0xf4] sm:$0xf0]  ;;  %v2684_v26 = vor.u32 %v3291_v19, %v2681_v20 }
 0xa55   :  { %vm824_vm14 = vmor %vm822_vm13, %vm823_vm12  ;;  %v3360_v19 = vld [vmem:[%s4401_s7 + $0x158] sm:$0xff] }
 0xa56   :  { %v818_v30 = vmul.f32 %v3499_v56, %v817_v29  ;;  %v815_v31 = vsel %vm814_vm11, %v3497_v8, %v811_v28  ;;  %v2751_v8 = vld [vmem:[%s4400_s5 + $0xb8] sm:$0xf]  ;;  %v2692_v28 = vor.u32 %v3292_v40, %v2689_v24  ;;  %v3359_v40 = vld [vmem:[%s4401_s7 + $0x150] sm:$0xff] }
 0xa57   :  { %v826_v36 = vmul.f32 %v815_v31, %v3718_v23  ;;  %v3305_v23 = vld [vmem:[%s4400_s5 + $0xa4] sm:$0xf]  ;;  %v2752_v17 = vor.u32 %v3316_v9, %v2751_v8  ;;  %v3324_v29 = vld [vmem:[%s4401_s7 + $0x38] sm:$0xff]  ;;  %v3375_v24 = vld [vmem:[%s4401_s7 + $0x1d0] sm:$0xff] }
 0xa58   :  { %v819_v32 = vmul.f32 0.5, %v818_v30  ;;  %v2732_v54 = vor.u32 %v3305_v23, %v2729_v33  ;;  %v3340_v30 = vld [vmem:[%s4401_s7 + $0xb8] sm:$0xff]  ;;  %v3345_v23 = vld [vmem:[%s4401_s7 + $0xe0] sm:$0xff] }
 0xa59   :  { %v829_v41 = vmul.f32 %v828_v35, %v826_v36  ;;  %v3332_v31 = vld [vmem:[%s4401_s7 + $0x78] sm:$0xff]  ;;  %v3331_v36 = vld [vmem:[%s4401_s7 + $0x70] sm:$0xff]  ;;  %v3353_v8 = vld [vmem:[%s4401_s7 + $0x120] sm:$0xff] }
 0xa5a   :  { %v820_v34 = vsub.f32 1.5, %v819_v32  ;;  %v3348_v32 = vld [vmem:[%s4401_s7 + $0xf8] sm:$0xff]  ;;  %v3369_v9 = vld [vmem:[%s4401_s7 + $0x1a0] sm:$0xff] }
 0xa5b   :  { %v3851_v46 = vadd.f32 %v831_v39, %v829_v41  ;;  %v3330_v41 = vld [vmem:[%s4401_s7 + $0x68] sm:$0xff]  ;;  %v3320_v33 = vld [vmem:[%s4401_s7 + $0x18] sm:$0xff] }
 0xa5c   :  { %v821_v37 = vmul.f32 %v3499_v56, %v820_v34  ;;  %v3323_v34 = vld [vmem:[%s4401_s7 + $0x30] sm:$0xff]  ;;  %v3376_v20 = vld [vmem:[%s4401_s7 + $0x1d8] sm:$0xff] }
 0xa5e   :  { %v825_v38 = vsel %vm824_vm14, %v3499_v56, %v821_v37  ;;  %v2688_v56 = vor.u32 %v3300_v22, %v2687_v21  ;;  %v3347_v37 = vld [vmem:[%s4401_s7 + $0xf0] sm:$0xff]  ;;  %v3350_v21 = vld [vmem:[%s4401_s7 + $0x108] sm:$0xff] }
 0xa5f   :  { %v827_v42 = vmul.f32 %v825_v38, %v3724_v27  ;;  %v2735_v27 = vld [vmem:[%s4400_s5 + $0xa8] sm:$0xf] }
 0xa60   :  { %v2736_v58 = vor.u32 %v3314_v48, %v2735_v27  ;;  %v3322_v38 = vld [vmem:[%s4401_s7 + $0x28] sm:$0xff]  ;;  %v3336_v27 = vld [vmem:[%s4401_s7 + $0x98] sm:$0xff] }
 0xa61   :  { %v830_v43 = vmul.f32 %v828_v35, %v827_v42  ;;  %v3339_v35 = vld [vmem:[%s4401_s7 + $0xb0] sm:$0xff]  ;;  %v3346_v42 = vld [vmem:[%s4401_s7 + $0xe8] sm:$0xff]  ;;  %v3328_v48 = vld [vmem:[%s4401_s7 + $0x58] sm:$0xff] }
 0xa62   :  { %v3366_v22 = vld [vmem:[%s4401_s7 + $0x188] sm:$0xff] }
 0xa63   :  { %v3853_v47 = vadd.f32 %v831_v39, %v830_v43  ;;  %v3338_v39 = vld [vmem:[%s4401_s7 + $0xa8] sm:$0xff]  ;;  %v3321_v43 = vld [vmem:[%s4401_s7 + $0x20] sm:$0xff] }
 0xa65   :  { %v3866_v51 = vpack.c.bf16 %v3853_v47, %v3851_v46 }
 0xa67   :  { %2757 = vmatmul.msk.bf16.vlgmr.msrb.gmra.mxu1 %vm33_vm0, %v3866_v51  ;;  %2758 = vmatmul.msk.bf16.vlgmr.msra.gmra.mxu2 %vm33_vm0, %v3866_v51 }
 0xa68   :  { %2759 = vmatmul.msk.bf16.vlgmr.msra.gmra.mxu0 %vm33_vm0, %v3866_v51  ;;  %2760 = vmatmul.msk.bf16.vlgmr.msra.gmra.mxu3 %vm33_vm0, %v3866_v51 }
 0xa69   :  { %1184 = vmatpush.bf16.msrb.mxu1 %v2728_v53  ;;  %1198 = vmatpush.bf16.msra.mxu2 %v2732_v54  ;;  %v3335_v53 = vld [vmem:[%s4401_s7 + $0x90] sm:$0xff] }
 0xa6a   :  { %1212 = vmatpush.bf16.msra.mxu0 %v2736_v58  ;;  %1226 = vmatpush.bf16.msra.mxu3 %v2740_v59  ;;  %v3327_v54 = vld [vmem:[%s4401_s7 + $0x50] sm:$0xff]  ;;  %v3326_v58 = vld [vmem:[%s4401_s7 + $0x48] sm:$0xff] }
 0xa6b   :  { %v3342_v59 = vld [vmem:[%s4401_s7 + $0xc8] sm:$0xff] }
 0xa6d   :  { %1185 = vmatpush.bf16.msrb.mxu1 %v2664_v1  ;;  %1199 = vmatpush.bf16.msra.mxu2 %v2668_v2  ;;  %v3364_v1 = vld [vmem:[%s4401_s7 + $0x178] sm:$0xff] }
 0xa6e   :  { %1213 = vmatpush.bf16.msra.mxu0 %v2672_v3  ;;  %1227 = vmatpush.bf16.msra.mxu3 %v2676_v4  ;;  %v3380_v2 = vld [vmem:[%s4401_s7 + $0x1f8] sm:$0xff]  ;;  %v3355_v3 = vld [vmem:[%s4401_s7 + $0x130] sm:$0xff] }
 0xa6f   :  { %v3371_v4 = vld [vmem:[%s4401_s7 + $0x1b0] sm:$0xff] }
 0xa77   :  { %2761 = vmatmul.msk.bf16.vlgmr.msra.gmra.mxu1 %vm33_vm0, %v3866_v51  ;;  %2762 = vmatmul.msk.bf16.vlgmr.msrb.gmra.mxu2 %vm33_vm0, %v3866_v51 }
 0xa78   :  { %2763 = vmatmul.msk.bf16.vlgmr.msrb.gmra.mxu0 %vm33_vm0, %v3866_v51  ;;  %2764 = vmatmul.msk.bf16.vlgmr.msrb.gmra.mxu3 %vm33_vm0, %v3866_v51 }
 0xa79   :  { %1240 = vmatpush.bf16.msra.mxu1 %v2744_v13  ;;  %1254 = vmatpush.bf16.msrb.mxu2 %v2748_v14  ;;  %v3352_v13 = vld [vmem:[%s4401_s7 + $0x118] sm:$0xff] }
 0xa7a   :  { %1268 = vmatpush.bf16.msrb.mxu0 %v2752_v17  ;;  %1282 = vmatpush.bf16.msrb.mxu3 %v2756_v18  ;;  %v3368_v14 = vld [vmem:[%s4401_s7 + $0x198] sm:$0xff]  ;;  %v3351_v17 = vld [vmem:[%s4401_s7 + $0x110] sm:$0xff] }
 0xa7b   :  { %v3367_v18 = vld [vmem:[%s4401_s7 + $0x190] sm:$0xff] }
 0xa7d   :  { %1241 = vmatpush.bf16.msra.mxu1 %v2680_v25  ;;  %1255 = vmatpush.bf16.msrb.mxu2 %v2684_v26  ;;  %v3349_v25 = vld [vmem:[%s4401_s7 + $0x100] sm:$0xff] }
 0xa7e   :  { %1269 = vmatpush.bf16.msrb.mxu0 %v2688_v56  ;;  %1283 = vmatpush.bf16.msrb.mxu3 %v2692_v28  ;;  %v3365_v26 = vld [vmem:[%s4401_s7 + $0x180] sm:$0xff]  ;;  %v3358_v56 = vld [vmem:[%s4401_s7 + $0x148] sm:$0xff] }
 0xa7f   :  { %v3374_v28 = vld [vmem:[%s4401_s7 + $0x1c8] sm:$0xff] }
 0xa87   :  { %2765 = vmatmul.msk.bf16.vlgmr.msrb.gmra.mxu1 %vm33_vm0, %v3866_v51  ;;  %2766 = vmatmul.msk.bf16.vlgmr.msra.gmra.mxu2 %vm33_vm0, %v3866_v51 }
 0xa88   :  { %2767 = vmatmul.msk.bf16.vlgmr.msra.gmra.mxu0 %vm33_vm0, %v3866_v51  ;;  %2768 = vmatmul.msk.bf16.vlgmr.msra.gmra.mxu3 %vm33_vm0, %v3866_v51 }
 0xa89   :  { %2363 = vmatpush.bf16.msrb.mxu1 %v3324_v29  ;;  %2391 = vmatpush.bf16.msra.mxu0 %v3340_v30  ;;  %v3357_v29 = vld [vmem:[%s4401_s7 + $0x140] sm:$0xff] }
 0xa8a   :  { %2377 = vmatpush.bf16.msra.mxu2 %v3332_v31  ;;  %2405 = vmatpush.bf16.msra.mxu3 %v3348_v32  ;;  %v3373_v30 = vld [vmem:[%s4401_s7 + $0x1c0] sm:$0xff] }
 0xa8b   :  { %v4167_v31 = vld [vmem:[%s4402_s6] sm:$0xff] }
 0xa8d   :  { %2364 = vmatpush.bf16.msrb.mxu1 %v3323_v34  ;;  %2392 = vmatpush.bf16.msra.mxu0 %v3339_v35  ;;  %v871_v35 = vperm.slane %v4167_v31, 0 }
 0xa8e   :  { %2378 = vmatpush.bf16.msra.mxu2 %v3331_v36  ;;  %2406 = vmatpush.bf16.msra.mxu3 %v3347_v37  ;;  %v873_v36 = vperm.slane %v4167_v31, 2 }
 0xa91   :  { %2365 = vmatpush.bf16.msrb.mxu1 %v3322_v38  ;;  %2393 = vmatpush.bf16.msra.mxu0 %v3338_v39 }
 0xa92   :  { %2379 = vmatpush.bf16.msra.mxu2 %v3330_v41  ;;  %2407 = vmatpush.bf16.msra.mxu3 %v3346_v42 }
 0xa95   :  { %2366 = vmatpush.bf16.msrb.mxu1 %v3321_v43  ;;  %2394 = vmatpush.bf16.msra.mxu0 %v3337_v44  ;;  %v872_v43 = vperm.slane %v4167_v31, 1 }
 0xa96   :  { %2380 = vmatpush.bf16.msra.mxu2 %v3329_v45  ;;  %2408 = vmatpush.bf16.msra.mxu3 %v3345_v23  ;;  %v874_v23 = vperm.slane %v4167_v31, 3 }
 0xa97   :  { %2769 = vmatmul.msk.bf16.vlgmr.msra.gmra.mxu1 %vm33_vm0, %v3866_v51  ;;  %2770 = vmatmul.msk.bf16.vlgmr.msrb.gmra.mxu2 %vm33_vm0, %v3866_v51 }
 0xa98   :  { %2771 = vmatmul.msk.bf16.vlgmr.msrb.gmra.mxu0 %vm33_vm0, %v3866_v51  ;;  %2772 = vmatmul.msk.bf16.vlgmr.msrb.gmra.mxu3 %vm33_vm0, %v3866_v51  ;;  %v3343_v51 = vld [vmem:[%s4401_s7 + $0xd0] sm:$0xff] }
 0xa99   :  { %2367 = vmatpush.bf16.msrb.mxu1 %v3320_v33  ;;  %2395 = vmatpush.bf16.msra.mxu0 %v3336_v27 }
 0xa9a   :  { %2381 = vmatpush.bf16.msra.mxu2 %v3328_v48  ;;  %2409 = vmatpush.bf16.msra.mxu3 %v3344_v49 }
 0xa9d   :  { %2368 = vmatpush.bf16.msrb.mxu1 %v3319_v50  ;;  %2396 = vmatpush.bf16.msra.mxu0 %v3335_v53  ;;  %v3388_v53 = vld [vmem:[%s4401_s7 + $0x238] sm:$0xff] }
 0xa9e   :  { %2382 = vmatpush.bf16.msra.mxu2 %v3327_v54  ;;  %2410 = vmatpush.bf16.msra.mxu3 %v3343_v51 }
 0xaa1   :  { %2369 = vmatpush.bf16.msrb.mxu1 %v3318_v55  ;;  %2397 = vmatpush.bf16.msra.mxu0 %v3334_v57  ;;  %v3404_v55 = vld [vmem:[%s4401_s7 + $0x2b8] sm:$0xff] }
 0xaa2   :  { %2383 = vmatpush.bf16.msra.mxu2 %v3326_v58  ;;  %2411 = vmatpush.bf16.msra.mxu3 %v3342_v59 }
 0xaa5   :  { %2370 = vmatpush.bf16.msrb.mxu1 %v3317_v60  ;;  %2398 = vmatpush.bf16.msra.mxu0 %v3333_v61 }
 0xaa6   :  { %2384 = vmatpush.bf16.msra.mxu2 %v3325_v63  ;;  %2412 = vmatpush.bf16.msra.mxu3 %v3341_v0  ;;  %v3387_v63 = vld [vmem:[%s4401_s7 + $0x230] sm:$0xff] }
 0xaa9   :  { %2419 = vmatpush.bf16.msra.mxu1 %v3356_v52  ;;  %2447 = vmatpush.bf16.msrb.mxu0 %v3372_v62 }
 0xaaa   :  { %2433 = vmatpush.bf16.msrb.mxu2 %v3364_v1  ;;  %2461 = vmatpush.bf16.msrb.mxu3 %v3380_v2 }
 0xaad   :  { %2420 = vmatpush.bf16.msra.mxu1 %v3355_v3  ;;  %2448 = vmatpush.bf16.msrb.mxu0 %v3371_v4  ;;  %v3403_v3 = vld [vmem:[%s4401_s7 + $0x2b0] sm:$0xff] }
 0xaae   :  { %2434 = vmatpush.bf16.msrb.mxu2 %v3363_v5  ;;  %2462 = vmatpush.bf16.msrb.mxu3 %v3379_v6  ;;  %v3396_v6 = vld [vmem:[%s4401_s7 + $0x278] sm:$0xff] }
 0xab1   :  { %2421 = vmatpush.bf16.msra.mxu1 %v3354_v10  ;;  %2449 = vmatpush.bf16.msrb.mxu0 %v3370_v7  ;;  %v875_v7 = vperm.slane %v4167_v31, 4 }
 0xab2   :  { %2435 = vmatpush.bf16.msrb.mxu2 %v3362_v11  ;;  %2463 = vmatpush.bf16.msrb.mxu3 %v3378_v12  ;;  %v877_v11 = vperm.slane %v4167_v31, 6  ;;  %v3386_v12 = vld [vmem:[%s4401_s7 + $0x228] sm:$0xff] }
 0xab5   :  { %2422 = vmatpush.bf16.msra.mxu1 %v3353_v8  ;;  %2450 = vmatpush.bf16.msrb.mxu0 %v3369_v9  ;;  %v3412_v8 = vld [vmem:[%s4401_s7 + $0x2f8] sm:$0xff] }
 0xab6   :  { %2436 = vmatpush.bf16.msrb.mxu2 %v3361_v15  ;;  %2464 = vmatpush.bf16.msrb.mxu3 %v3377_v16  ;;  %v3395_v15 = vld [vmem:[%s4401_s7 + $0x270] sm:$0xff] }
 0xab9   :  { %2423 = vmatpush.bf16.msra.mxu1 %v3352_v13  ;;  %2451 = vmatpush.bf16.msrb.mxu0 %v3368_v14  ;;  %v3402_v13 = vld [vmem:[%s4401_s7 + $0x2a8] sm:$0xff] }
 0xaba   :  { %2437 = vmatpush.bf16.msrb.mxu2 %v3360_v19  ;;  %2465 = vmatpush.bf16.msrb.mxu3 %v3376_v20 }
 0xabd   :  { %2424 = vmatpush.bf16.msra.mxu1 %v3351_v17  ;;  %2452 = vmatpush.bf16.msrb.mxu0 %v3367_v18  ;;  %v3411_v18 = vld [vmem:[%s4401_s7 + $0x2f0] sm:$0xff] }
 0xabe   :  { %2438 = vmatpush.bf16.msrb.mxu2 %v3359_v40  ;;  %2466 = vmatpush.bf16.msrb.mxu3 %v3375_v24 }
 0xac1   :  { %2425 = vmatpush.bf16.msra.mxu1 %v3350_v21  ;;  %2453 = vmatpush.bf16.msrb.mxu0 %v3366_v22  ;;  %v3385_v21 = vld [vmem:[%s4401_s7 + $0x220] sm:$0xff]  ;;  %v876_v22 = vperm.slane %v4167_v31, 5 }
 0xac2   :  { %2439 = vmatpush.bf16.msrb.mxu2 %v3358_v56  ;;  %2467 = vmatpush.bf16.msrb.mxu3 %v3374_v28  ;;  %v3394_v28 = vld [vmem:[%s4401_s7 + $0x268] sm:$0xff] }
 0xac5   :  { %2426 = vmatpush.bf16.msra.mxu1 %v3349_v25  ;;  %2454 = vmatpush.bf16.msrb.mxu0 %v3365_v26  ;;  %v3401_v25 = vld [vmem:[%s4401_s7 + $0x2a0] sm:$0xff]  ;;  %v878_v26 = vperm.slane %v4167_v31, 7  ;;  %v3384_v31 = vld [vmem:[%s4401_s7 + $0x218] sm:$0xff] }
 0xac6   :  { %2440 = vmatpush.bf16.msrb.mxu2 %v3357_v29  ;;  %2468 = vmatpush.bf16.msrb.mxu3 %v3373_v30 }
 0xae4   :  { %v1075_v32 = vpop.f32.mrf.mxu1 }
 0xae5   :  { %v1103_v34 = vpop.f32.mrf.mxu0  ;;  %v1076_v38 = vadd.f32 %v1075_v32, %v871_v35  ;;  %v3410_v32 = vld [vmem:[%s4401_s7 + $0x2e8] sm:$0xff] }
 0xae6   :  { %v1104_v41 = vadd.f32 %v1103_v34, %v873_v36 }
 0xae7   :  { %v1290_v27 = vmax.f32 %v1076_v38, 0.0  ;;  %v3400_v38 = vld [vmem:[%s4401_s7 + $0x298] sm:$0xff] }
 0xae8   :  { %v1292_v49 = vmax.f32 %v1104_v41, 0.0 }
 0xaea   :  { %v1089_v37 = vpop.f32.mrf.mxu2 }
 0xaeb   :  { %v1117_v39 = vpop.f32.mrf.mxu3  ;;  %v1090_v54 = vadd.f32 %v1089_v37, %v872_v43 }
 0xaec   :  { %v1077_v42 = vpop.f32.mrf.mxu1  ;;  %v1118_v57 = vadd.f32 %v1117_v39, %v874_v23 }
 0xaed   :  { %v1078_v44 = vadd.f32 %v1077_v42, %v871_v35  ;;  %v1105_v45 = vpop.f32.mrf.mxu0  ;;  %v1291_v0 = vmax.f32 %v1090_v54, 0.0 }
 0xaee   :  { %v1106_v33 = vadd.f32 %v1105_v45, %v873_v36  ;;  %v1293_v4 = vmax.f32 %v1118_v57, 0.0 }
 0xaef   :  { %v1306_v48 = vmax.f32 %v1078_v44, 0.0 }
 0xaf0   :  { %v1308_v50 = vmax.f32 %v1106_v33, 0.0 }
 0xaf1   :  { %v1322_v51 = vpack.c.bf16 %v1306_v48, %v1290_v27  ;;  %v4234_v27 = vld [vmem:[%s4402_s6 + $0x8] sm:$0xff] }
 0xaf2   :  { %v1324_v58 = vpack.c.bf16 %v1308_v50, %v1292_v49  ;;  %v1091_v59 = vpop.f32.mrf.mxu2  ;;  %v3383_v49 = vld [vmem:[%s4401_s7 + $0x210] sm:$0xff] }
 0xaf3   :  { %v1092_v60 = vadd.f32 %v1091_v59, %v872_v43  ;;  %v1119_v61 = vpop.f32.mrf.mxu3  ;;  %2371 = vmatmul.bf16.vlgmr.msrb.gmra.mxu1 %v1322_v51  ;;  %v3393_v43 = vld [vmem:[%s4401_s7 + $0x260] sm:$0xff]  ;;  %v3399_v51 = vld [vmem:[%s4401_s7 + $0x290] sm:$0xff] }
 0xaf4   :  { %v1120_v52 = vadd.f32 %v1119_v61, %v874_v23  ;;  %2399 = vmatmul.bf16.vlgmr.msra.gmra.mxu0 %v1324_v58  ;;  %2475 = vmatpush.bf16.msrb.mxu1 %v3388_v53  ;;  %v1131_v62 = vpop.f32.mrf.mxu1  ;;  %v3409_v23 = vld [vmem:[%s4401_s7 + $0x2e0] sm:$0xff]  ;;  %v3392_v58 = vld [vmem:[%s4401_s7 + $0x258] sm:$0xff] }
 0xaf5   :  { %v1307_v1 = vmax.f32 %v1092_v60, 0.0  ;;  %2503 = vmatpush.bf16.msra.mxu0 %v3404_v55  ;;  %v1159_v2 = vpop.f32.mrf.mxu0  ;;  %v1132_v16 = vadd.f32 %v1131_v62, %v875_v7  ;;  %v879_v60 = vperm.slane %v4234_v27, 0  ;;  %v3408_v61 = vld [vmem:[%s4401_s7 + $0x2d8] sm:$0xff]  ;;  %v881_v62 = vperm.slane %v4234_v27, 2 }
 0xaf6   :  { %v1309_v5 = vmax.f32 %v1120_v52, 0.0  ;;  %v1160_v19 = vadd.f32 %v1159_v2, %v877_v11  ;;  %v3391_v2 = vld [vmem:[%s4401_s7 + $0x250] sm:$0xff] }
 0xaf7   :  { %v1323_v10 = vpack.c.bf16 %v1307_v1, %v1291_v0  ;;  %v1294_v29 = vmax.f32 %v1132_v16, 0.0  ;;  %v3398_v0 = vld [vmem:[%s4401_s7 + $0x288] sm:$0xff]  ;;  %v3436_v16 = vld [vmem:[%s4401_s7 + $0x3b8] sm:$0xff] }
 0xaf8   :  { %v1325_v9 = vpack.c.bf16 %v1309_v5, %v1293_v4  ;;  %2476 = vmatpush.bf16.msrb.mxu1 %v3387_v63  ;;  %v1296_v34 = vmax.f32 %v1160_v19, 0.0  ;;  %v3382_v63 = vld [vmem:[%s4401_s7 + $0x208] sm:$0xff]  ;;  %v3407_v5 = vld [vmem:[%s4401_s7 + $0x2d0] sm:$0xff] }
 0xaf9   :  { %2504 = vmatpush.bf16.msra.mxu0 %v3403_v3  ;;  %2385 = vmatmul.bf16.vlgmr.msra.gmra.mxu2 %v1323_v10 }
 0xafa   :  { %2413 = vmatmul.bf16.vlgmr.msra.gmra.mxu3 %v1325_v9  ;;  %2489 = vmatpush.bf16.msra.mxu2 %v3396_v6  ;;  %v1145_v14 = vpop.f32.mrf.mxu2 }
 0xafb   :  { %2517 = vmatpush.bf16.msra.mxu3 %v3412_v8  ;;  %v1173_v17 = vpop.f32.mrf.mxu3  ;;  %v1146_v36 = vadd.f32 %v1145_v14, %v876_v22  ;;  %v880_v8 = vperm.slane %v4234_v27, 1  ;;  %v882_v14 = vperm.slane %v4234_v27, 3 }
 0xafc   :  { %2477 = vmatpush.bf16.msrb.mxu1 %v3386_v12  ;;  %v1133_v20 = vpop.f32.mrf.mxu1  ;;  %v1174_v39 = vadd.f32 %v1173_v17, %v878_v26  ;;  %v3397_v12 = vld [vmem:[%s4401_s7 + $0x280] sm:$0xff]  ;;  %v3390_v17 = vld [vmem:[%s4401_s7 + $0x248] sm:$0xff] }
 0xafd   :  { %2505 = vmatpush.bf16.msra.mxu0 %v3402_v13  ;;  %v1134_v40 = vadd.f32 %v1133_v20, %v875_v7  ;;  %v1161_v24 = vpop.f32.mrf.mxu0  ;;  %v1295_v50 = vmax.f32 %v1146_v36, 0.0  ;;  %v3381_v7 = vld [vmem:[%s4401_s7 + $0x200] sm:$0xff]  ;;  %v3420_v13 = vld [vmem:[%s4401_s7 + $0x338] sm:$0xff]  ;;  %v3406_v20 = vld [vmem:[%s4401_s7 + $0x2c8] sm:$0xff] }
 0xafe   :  { %v1162_v56 = vadd.f32 %v1161_v24, %v877_v11  ;;  %2490 = vmatpush.bf16.msra.mxu2 %v3395_v15  ;;  %v1297_v55 = vmax.f32 %v1174_v39, 0.0 }
 0xaff   :  { %v1310_v30 = vmax.f32 %v1134_v40, 0.0  ;;  %2518 = vmatpush.bf16.msra.mxu3 %v3411_v18 }
 0xb00   :  { %v1312_v35 = vmax.f32 %v1162_v56, 0.0  ;;  %2478 = vmatpush.bf16.msrb.mxu1 %v3385_v21 }
 0xb01   :  { %v1326_v37 = vpack.c.bf16 %v1310_v30, %v1294_v29  ;;  %2506 = vmatpush.bf16.msra.mxu0 %v3401_v25  ;;  %v3419_v25 = vld [vmem:[%s4401_s7 + $0x330] sm:$0xff]  ;;  %v3389_v30 = vld [vmem:[%s4401_s7 + $0x240] sm:$0xff] }
 0xb02   :  { %v1328_v41 = vpack.c.bf16 %v1312_v35, %v1296_v34  ;;  %2491 = vmatpush.bf16.msra.mxu2 %v3394_v28  ;;  %v1147_v42 = vpop.f32.mrf.mxu2  ;;  %v3435_v29 = vld [vmem:[%s4401_s7 + $0x3b0] sm:$0xff]  ;;  %v3405_v35 = vld [vmem:[%s4401_s7 + $0x2c0] sm:$0xff] }
 0xb03   :  { %2519 = vmatpush.bf16.msra.mxu3 %v3410_v32  ;;  %v1148_v44 = vadd.f32 %v1147_v42, %v876_v22  ;;  %v1175_v45 = vpop.f32.mrf.mxu3  ;;  %2427 = vmatmul.bf16.vlgmr.msra.gmra.mxu1 %v1326_v37  ;;  %v3444_v37 = vld [vmem:[%s4401_s7 + $0x3f8] sm:$0xff] }
 0xb04   :  { %v1176_v33 = vadd.f32 %v1175_v45, %v878_v26  ;;  %2455 = vmatmul.bf16.vlgmr.msrb.gmra.mxu0 %v1328_v41  ;;  %2479 = vmatpush.bf16.msrb.mxu1 %v3384_v31  ;;  %v1187_v48 = vpop.f32.mrf.mxu1  ;;  %v3428_v31 = vld [vmem:[%s4401_s7 + $0x378] sm:$0xff]  ;;  %v3418_v41 = vld [vmem:[%s4401_s7 + $0x328] sm:$0xff] }
 0xb05   :  { %v1311_v53 = vmax.f32 %v1148_v44, 0.0  ;;  %2507 = vmatpush.bf16.msra.mxu0 %v3400_v38  ;;  %v1215_v54 = vpop.f32.mrf.mxu0  ;;  %v1188_v3 = vadd.f32 %v1187_v48, %v879_v60  ;;  %v3434_v44 = vld [vmem:[%s4401_s7 + $0x3a8] sm:$0xff]  ;;  %v3443_v48 = vld [vmem:[%s4401_s7 + $0x3f0] sm:$0xff] }
 0xb06   :  { %v1313_v57 = vmax.f32 %v1176_v33, 0.0  ;;  %2492 = vmatpush.bf16.msra.mxu2 %v3393_v43  ;;  %v1216_v6 = vadd.f32 %v1215_v54, %v881_v62  ;;  %v3433_v54 = vld [vmem:[%s4401_s7 + $0x3a0] sm:$0xff] }
 0xb07   :  { %v1327_v59 = vpack.c.bf16 %v1311_v53, %v1295_v50  ;;  %2520 = vmatpush.bf16.msra.mxu3 %v3409_v23  ;;  %v1298_v18 = vmax.f32 %v1188_v3, 0.0  ;;  %v3427_v23 = vld [vmem:[%s4401_s7 + $0x370] sm:$0xff]  ;;  %v3417_v50 = vld [vmem:[%s4401_s7 + $0x320] sm:$0xff] }
 0xb08   :  { %v1329_v52 = vpack.c.bf16 %v1313_v57, %v1297_v55  ;;  %2480 = vmatpush.bf16.msrb.mxu1 %v3383_v49  ;;  %v1300_v21 = vmax.f32 %v1216_v6, 0.0  ;;  %v3442_v55 = vld [vmem:[%s4401_s7 + $0x3e8] sm:$0xff]  ;;  %v3416_v57 = vld [vmem:[%s4401_s7 + $0x318] sm:$0xff] }
 0xb09   :  { %2508 = vmatpush.bf16.msra.mxu0 %v3399_v51  ;;  %2441 = vmatmul.bf16.vlgmr.msrb.gmra.mxu2 %v1327_v59  ;;  %v3426_v51 = vld [vmem:[%s4401_s7 + $0x368] sm:$0xff] }
 0xb0a   :  { %2469 = vmatmul.bf16.vlgmr.msrb.gmra.mxu3 %v1329_v52  ;;  %2493 = vmatpush.bf16.msra.mxu2 %v3392_v58  ;;  %v1201_v1 = vpop.f32.mrf.mxu2  ;;  %v3432_v58 = vld [vmem:[%s4401_s7 + $0x398] sm:$0xff]  ;;  %v3441_v52 = vld [vmem:[%s4401_s7 + $0x3e0] sm:$0xff]  ;;  %v3414_v6 = vld [vmem:[%s4401_s7 + $0x308] sm:$0xff] }
 0xb0b   :  { %2521 = vmatpush.bf16.msra.mxu3 %v3408_v61  ;;  %v1229_v4 = vpop.f32.mrf.mxu3  ;;  %v1202_v40 = vadd.f32 %v1201_v1, %v880_v8  ;;  %v3424_v1 = vld [vmem:[%s4401_s7 + $0x358] sm:$0xff] }
 0xb0c   :  { %2481 = vmatpush.bf16.msrb.mxu1 %v3382_v63  ;;  %v1189_v10 = vpop.f32.mrf.mxu1  ;;  %v1230_v26 = vadd.f32 %v1229_v4, %v882_v14  ;;  %v3431_v63 = vld [vmem:[%s4401_s7 + $0x390] sm:$0xff]  ;;  %v3440_v4 = vld [vmem:[%s4401_s7 + $0x3d8] sm:$0xff] }
 0xb0d   :  { %2509 = vmatpush.bf16.msra.mxu0 %v3398_v0  ;;  %v1190_v9 = vadd.f32 %v1189_v10, %v879_v60  ;;  %v1217_v11 = vpop.f32.mrf.mxu0  ;;  %v1299_v38 = vmax.f32 %v1202_v40, 0.0  ;;  %v3425_v60 = vld [vmem:[%s4401_s7 + $0x360] sm:$0xff] }
 0xb0e   :  { %v1218_v15 = vadd.f32 %v1217_v11, %v881_v62  ;;  %2494 = vmatpush.bf16.msra.mxu2 %v3391_v2  ;;  %v1301_v42 = vmax.f32 %v1230_v26, 0.0  ;;  %v3415_v62 = vld [vmem:[%s4401_s7 + $0x310] sm:$0xff]  ;;  %v883_v2 = vperm.slane %v4234_v27, 4 }
 0xb0f   :  { %v1314_v19 = vmax.f32 %v1190_v9, 0.0  ;;  %2522 = vmatpush.bf16.msra.mxu3 %v3407_v5  ;;  %v885_v5 = vperm.slane %v4234_v27, 6  ;;  %v3423_v9 = vld [vmem:[%s4401_s7 + $0x350] sm:$0xff] }
 0xb10   :  { %v1316_v22 = vmax.f32 %v1218_v15, 0.0  ;;  %2482 = vmatpush.bf16.msrb.mxu1 %v3381_v7  ;;  %v3430_v7 = vld [vmem:[%s4401_s7 + $0x388] sm:$0xff]  ;;  %v3413_v15 = vld [vmem:[%s4401_s7 + $0x300] sm:$0xff] }
 0xb11   :  { %v1330_v24 = vpack.c.bf16 %v1314_v19, %v1298_v18  ;;  %2510 = vmatpush.bf16.msra.mxu0 %v3397_v12  ;;  %v3439_v12 = vld [vmem:[%s4401_s7 + $0x3d0] sm:$0xff]  ;;  %v3429_v19 = vld [vmem:[%s4401_s7 + $0x380] sm:$0xff] }
 0xb12   :  { %v1332_v56 = vpack.c.bf16 %v1316_v22, %v1300_v21  ;;  %2495 = vmatpush.bf16.msra.mxu2 %v3390_v17  ;;  %v1203_v28 = vpop.f32.mrf.mxu2  ;;  %v3422_v22 = vld [vmem:[%s4401_s7 + $0x348] sm:$0xff] }
 0xb13   :  { %2523 = vmatpush.bf16.msra.mxu3 %v3406_v20  ;;  %v1204_v32 = vadd.f32 %v1203_v28, %v880_v8  ;;  %v1231_v34 = vpop.f32.mrf.mxu3  ;;  %2483 = vmatmul.bf16.vlgmr.msrb.gmra.mxu1 %v1330_v24  ;;  %v886_v20 = vperm.slane %v4234_v27, 7 }
 0xb14   :  { %2531 = vmatpush.bf16.msra.mxu1 %v3420_v13  ;;  %v1232_v36 = vadd.f32 %v1231_v34, %v882_v14  ;;  %2511 = vmatmul.bf16.vlgmr.msra.gmra.mxu0 %v1332_v56  ;;  %v1243_v49 = vpop.f32.mrf.mxu1 }
 0xb15   :  { %2559 = vmatpush.bf16.msrb.mxu0 %v3436_v16  ;;  %v1315_v39 = vmax.f32 %v1204_v32, 0.0  ;;  %v1271_v53 = vpop.f32.mrf.mxu0  ;;  %v1244_v11 = vadd.f32 %v1243_v49, %v883_v2  ;;  %v884_v16 = vperm.slane %v4234_v27, 5  ;;  %v3421_v32 = vld [vmem:[%s4401_s7 + $0x340] sm:$0xff] }
 0xb16   :  { %v1317_v43 = vmax.f32 %v1232_v36, 0.0  ;;  %2496 = vmatpush.bf16.msra.mxu2 %v3389_v30  ;;  %v1272_v13 = vadd.f32 %v1271_v53, %v885_v5  ;;  %v3500_v49 = vld [vmem:[%s4398_s1] sm:$0xff] }
 0xb17   :  { %v1331_v45 = vpack.c.bf16 %v1315_v39, %v1299_v38  ;;  %2524 = vmatpush.bf16.msra.mxu3 %v3405_v35  ;;  %v1302_v40 = vmax.f32 %v1244_v11, 0.0  ;;  %v3437_v35 = vld [vmem:[%s4401_s7 + $0x3c0] sm:$0xff] }
 0xb18   :  { %2532 = vmatpush.bf16.msra.mxu1 %v3419_v25  ;;  %v1333_v33 = vpack.c.bf16 %v1317_v43, %v1301_v42  ;;  %v3438_v25 = vld [vmem:[%s4401_s7 + $0x3c8] sm:$0xff]  ;;  %v1304_v26 = vmax.f32 %v1272_v13, 0.0 }
 0xb19   :  { %2560 = vmatpush.bf16.msrb.mxu0 %v3435_v29  ;;  %2497 = vmatmul.bf16.vlgmr.msra.gmra.mxu2 %v1331_v45 }
 0xb1a   :  { %2545 = vmatpush.bf16.msrb.mxu2 %v3428_v31  ;;  %2525 = vmatmul.bf16.vlgmr.msra.gmra.mxu3 %v1333_v33  ;;  %v1257_v59 = vpop.f32.mrf.mxu2 }
 0xb1b   :  { %2573 = vmatpush.bf16.msrb.mxu3 %v3444_v37  ;;  %v1285_v61 = vpop.f32.mrf.mxu3  ;;  %v1258_v28 = vadd.f32 %v1257_v59, %v884_v16 }
 0xb1c   :  { %2533 = vmatpush.bf16.msra.mxu1 %v3418_v41  ;;  %v1245_v0 = vpop.f32.mrf.mxu1  ;;  %v1286_v27 = vadd.f32 %v1285_v61, %v886_v20 }
 0xb1d   :  { %2561 = vmatpush.bf16.msrb.mxu0 %v3434_v44  ;;  %v1273_v3 = vpop.f32.mrf.mxu0  ;;  %v1246_v10 = vadd.f32 %v1245_v0, %v883_v2  ;;  %v1303_v36 = vmax.f32 %v1258_v28, 0.0 }
 0xb1e   :  { %2546 = vmatpush.bf16.msrb.mxu2 %v3427_v23  ;;  %v1274_v8 = vadd.f32 %v1273_v3, %v885_v5  ;;  %v1305_v37 = vmax.f32 %v1286_v27, 0.0 }
 0xb1f   :  { %2574 = vmatpush.bf16.msrb.mxu3 %v3443_v48  ;;  %v1318_v17 = vmax.f32 %v1246_v10, 0.0 }
 0xb20   :  { %2534 = vmatpush.bf16.msra.mxu1 %v3417_v50  ;;  %v1320_v21 = vmax.f32 %v1274_v8, 0.0  ;;  %v1594_v50 = vperm.slane %v3500_v49, 5 }
 0xb21   :  { %2562 = vmatpush.bf16.msrb.mxu0 %v3433_v54  ;;  %v1334_v29 = vpack.c.bf16 %v1318_v17, %v1302_v40 }
 0xb22   :  { %2547 = vmatpush.bf16.msrb.mxu2 %v3426_v51  ;;  %v1259_v14 = vpop.f32.mrf.mxu2  ;;  %v1336_v30 = vpack.c.bf16 %v1320_v21, %v1304_v26 }
 0xb23   :  { %2575 = vmatpush.bf16.msrb.mxu3 %v3442_v55  ;;  %v1287_v18 = vpop.f32.mrf.mxu3  ;;  %v1260_v24 = vadd.f32 %v1259_v14, %v884_v16 }
 0xb24   :  { %2535 = vmatpush.bf16.msra.mxu1 %v3416_v57  ;;  %v1288_v56 = vadd.f32 %v1287_v18, %v886_v20 }
 0xb25   :  { %2563 = vmatpush.bf16.msrb.mxu0 %v3432_v58  ;;  %v1319_v34 = vmax.f32 %v1260_v24, 0.0 }
 0xb26   :  { %2548 = vmatpush.bf16.msrb.mxu2 %v3425_v60  ;;  %v1321_v31 = vmax.f32 %v1288_v56, 0.0 }
 0xb27   :  { %2576 = vmatpush.bf16.msrb.mxu3 %v3441_v52  ;;  %v1335_v38 = vpack.c.bf16 %v1319_v34, %v1303_v36 }
 0xb28   :  { %2536 = vmatpush.bf16.msra.mxu1 %v3415_v62  ;;  %v1337_v39 = vpack.c.bf16 %v1321_v31, %v1305_v37 }
 0xb29   :  { %2564 = vmatpush.bf16.msrb.mxu0 %v3431_v63 }
 0xb2a   :  { %2549 = vmatpush.bf16.msrb.mxu2 %v3424_v1 }
 0xb2b   :  { %2577 = vmatpush.bf16.msrb.mxu3 %v3440_v4 }
 0xb2c   :  { %2537 = vmatpush.bf16.msra.mxu1 %v3414_v6 }
 0xb2d   :  { %2565 = vmatpush.bf16.msrb.mxu0 %v3430_v7 }
 0xb2e   :  { %2550 = vmatpush.bf16.msrb.mxu2 %v3423_v9 }
 0xb2f   :  { %2578 = vmatpush.bf16.msrb.mxu3 %v3439_v12 }
 0xb30   :  { %2538 = vmatpush.bf16.msra.mxu1 %v3413_v15 }
 0xb31   :  { %2566 = vmatpush.bf16.msrb.mxu0 %v3429_v19 }
 0xb32   :  { %2551 = vmatpush.bf16.msrb.mxu2 %v3422_v22 }
 0xb33   :  { %2579 = vmatpush.bf16.msrb.mxu3 %v3438_v25  ;;  %2539 = vmatmul.bf16.vlgmr.msra.gmra.mxu1 %v1334_v29 }
 0xb34   :  { %2567 = vmatmul.bf16.vlgmr.msrb.gmra.mxu0 %v1336_v30 }
 0xb36   :  { %2552 = vmatpush.bf16.msrb.mxu2 %v3421_v32 }
 0xb37   :  { %2580 = vmatpush.bf16.msrb.mxu3 %v3437_v35 }
 0xb39   :  { %2553 = vmatmul.bf16.vlgmr.msrb.gmra.mxu2 %v1335_v38 }
 0xb3a   :  { %2581 = vmatmul.bf16.vlgmr.msrb.gmra.mxu3 %v1337_v39 }
 0xb70   :  { %v2372_v41 = vpop.f32.mrf.mxu1 }
 0xb71   :  { %v2400_v42 = vpop.f32.mrf.mxu0  ;;  %v2373_v54 = vadd.f32 %v2372_v41, %v1594_v50 }
 0xb78   :  { %v2374_v45 = vpop.f32.mrf.mxu1 }
 0xb79   :  { %v2402_v23 = vpop.f32.mrf.mxu0  ;;  %v2375_v61 = vadd.f32 %v2374_v45, %v1594_v50 }
 0xb7c   :  { %v2386_v43 = vpop.f32.mrf.mxu2 }
 0xb7d   :  { %v2414_v44 = vpop.f32.mrf.mxu3  ;;  %v2387_v51 = vadd.f32 %v2386_v43, %v2373_v54 }
 0xb7f   :  { %v2401_v59 = vadd.f32 %v2400_v42, %v2387_v51 }
 0xb80   :  { %v2428_v53 = vpop.f32.mrf.mxu1 }
 0xb81   :  { %v2456_v55 = vpop.f32.mrf.mxu0  ;;  %v2415_v52 = vadd.f32 %v2414_v44, %v2401_v59 }
 0xb83   :  { %v2429_v1 = vadd.f32 %v2428_v53, %v2415_v52 }
 0xb84   :  { %v2388_v33 = vpop.f32.mrf.mxu2 }
 0xb85   :  { %v2416_v48 = vpop.f32.mrf.mxu3  ;;  %v2389_v62 = vadd.f32 %v2388_v33, %v2375_v61 }
 0xb87   :  { %v2403_v2 = vadd.f32 %v2402_v23, %v2389_v62 }
 0xb88   :  { %v2430_v60 = vpop.f32.mrf.mxu1 }
 0xb89   :  { %v2458_v63 = vpop.f32.mrf.mxu0  ;;  %v2417_v6 = vadd.f32 %v2416_v48, %v2403_v2 }
 0xb8b   :  { %v2431_v7 = vadd.f32 %v2430_v60, %v2417_v6 }
 0xb8c   :  { %v2442_v57 = vpop.f32.mrf.mxu2 }
 0xb8d   :  { %v2470_v58 = vpop.f32.mrf.mxu3  ;;  %v2443_v4 = vadd.f32 %v2442_v57, %v2429_v1 }
 0xb8f   :  { %v2457_v10 = vadd.f32 %v2456_v55, %v2443_v4 }
 0xb90   :  { %v2484_v5 = vpop.f32.mrf.mxu1 }
 0xb91   :  { %v2512_v8 = vpop.f32.mrf.mxu0  ;;  %v2471_v11 = vadd.f32 %v2470_v58, %v2457_v10 }
 0xb93   :  { %v2485_v15 = vadd.f32 %v2484_v5, %v2471_v11 }
 0xb94   :  { %v2444_v0 = vpop.f32.mrf.mxu2 }
 0xb95   :  { %v2472_v3 = vpop.f32.mrf.mxu3  ;;  %v2445_v12 = vadd.f32 %v2444_v0, %v2431_v7 }
 0xb97   :  { %v2459_v16 = vadd.f32 %v2458_v63, %v2445_v12 }
 0xb98   :  { %v2486_v14 = vpop.f32.mrf.mxu1 }
 0xb99   :  { %v2473_v18 = vadd.f32 %v2472_v3, %v2459_v16  ;;  %v2514_v19 = vpop.f32.mrf.mxu0 }
 0xb9b   :  { %v2487_v24 = vadd.f32 %v2486_v14, %v2473_v18 }
 0xb9c   :  { %v2498_v9 = vpop.f32.mrf.mxu2 }
 0xb9d   :  { %v2526_v13 = vpop.f32.mrf.mxu3  ;;  %v2499_v17 = vadd.f32 %v2498_v9, %v2485_v15 }
 0xb9f   :  { %v2513_v21 = vadd.f32 %v2512_v8, %v2499_v17 }
 0xba1   :  { %v2527_v25 = vadd.f32 %v2526_v13, %v2513_v21 }
 0xba4   :  { %v2500_v20 = vpop.f32.mrf.mxu2 }
 0xba5   :  { %v2528_v22 = vpop.f32.mrf.mxu3  ;;  %v2501_v26 = vadd.f32 %v2500_v20, %v2487_v24 }
 0xba7   :  { %v2515_v27 = vadd.f32 %v2514_v19, %v2501_v26 }
 0xba9   :  { %v2529_v31 = vadd.f32 %v2528_v22, %v2515_v27 }
 0xbb0   :  { %v2540_v40 = vpop.f32.mrf.mxu1 }
 0xbb1   :  { %v2541_v56 = vadd.f32 %v2540_v40, %v2527_v25  ;;  %v2568_v28 = vpop.f32.mrf.mxu0 }
 0xbb8   :  { %v2542_v35 = vpop.f32.mrf.mxu1 }
 0xbb9   :  { %v2543_v37 = vadd.f32 %v2542_v35, %v2529_v31  ;;  %v2570_v42 = vpop.f32.mrf.mxu0 }
 0xbbc   :  { %v2554_v29 = vpop.f32.mrf.mxu2 }
 0xbbd   :  { %v2555_v30 = vadd.f32 %v2554_v29, %v2541_v56  ;;  %v2582_v32 = vpop.f32.mrf.mxu3 }
 0xbbf   :  { %v2569_v34 = vadd.f32 %v2568_v28, %v2555_v30 }
 0xbc1   :  { %v2583_v36 = vadd.f32 %v2582_v32, %v2569_v34 }
 0xbc3   :  { %v2587_v38 = vadd.f32 %v2583_v36, %v3851_v46 }
 0xbc4   :  { %v2556_v39 = vpop.f32.mrf.mxu2 }
 0xbc5   :  { %2589 = vst.msk [vmem:[%s4403_s8] sm:$0xff] %vm33_vm0, %v2587_v38  ;;  %v2557_v41 = vadd.f32 %v2556_v39, %v2543_v37  ;;  %v2584_v44 = vpop.f32.mrf.mxu3 }
 0xbc7   :  { %v2571_v43 = vadd.f32 %v2570_v42, %v2557_v41 }
 0xbc9   :  { %v2585_v45 = vadd.f32 %v2584_v44, %v2571_v43 }
 0xbcb   :  { %v2588_v23 = vadd.f32 %v2585_v45, %v3853_v47 }
 0xbcd   :  { %2590 = vst.msk [vmem:[%s4403_s8 + $0x8] sm:$0xff] %vm33_vm0, %v2588_v23 }

</bundles_post_ra>
